<compile_context>
chip_gen: v7x
topology: tpu7x:2x2x1
jax: 0.10.0
libtpu: 0.0.40
codegen_flags: <defaults>
</compile_context>

<pallas_src>
import jax
import jax.numpy as jnp
from jax.experimental import pallas as pl
from jax.experimental.pallas import tpu as pltpu

LANE = 128


def _round_up(x, m):
    return ((x + m - 1) // m) * m


def _leaky_relu(x, slope):
    return jnp.where(x > 0, x, slope * x)


def _pad2(a, rows, cols, dtype):
    r, c = a.shape
    return jnp.pad(a, ((0, rows - r), (0, cols - c))).astype(dtype)


def _choose_tm(n, tm_max):
    """Pick the batch tile: big tiles for large N; >=2 grid steps when affordable
    so a v7x chip can shard batch tiles across its two TensorCores."""
    n8 = max(8, _round_up(n, 8))
    if n8 <= tm_max:
        if n8 >= 128:
            # split mid-sized batches into two tiles (one per TC on v7x)
            return _round_up(pl.cdiv(n8, 2), 8)
        return n8            # tiny batch: one tile, avoid pure step overhead
    return tm_max            # large batch: n_pad/tm_max >= 2 steps automatically


def mlp_kernel(x_ref,
               w1_ref, b1_ref,
               w2_ref, b2_ref,
               w3_ref, b3_ref,
               w4_ref, b4_ref,
               o_ref):
    # All matmuls: bf16 operands on the MXU, f32 accumulation.
    # Bias add + leaky-relu stay f32 (v5e-safe, preserves accuracy).
    h = jnp.dot(x_ref[...], w1_ref[...],
                preferred_element_type=jnp.float32) + b1_ref[...]
    h = _leaky_relu(h, 0.2)

    h = jnp.dot(h.astype(jnp.bfloat16), w2_ref[...],
                preferred_element_type=jnp.float32) + b2_ref[...]
    h = _leaky_relu(h, 0.1)

    h = jnp.dot(h.astype(jnp.bfloat16), w3_ref[...],
                preferred_element_type=jnp.float32) + b3_ref[...]
    h = _leaky_relu(h, 0.1)

    o_ref[...] = (jnp.dot(h.astype(jnp.bfloat16), w4_ref[...],
                          preferred_element_type=jnp.float32)
                  + b4_ref[...]).astype(o_ref.dtype)


def fully_connected_forward(x, params, tm=1024):
    """x: (N, C, H, W) or (N, D). params: list of (W, b) with W (in, out), b (1, out)."""
    n = x.shape[0]
    x2d = x.reshape(n, -1).astype(jnp.float32)        # flatten(start_dim=1)
    d = x2d.shape[1]

    (w1, b1), (w2, b2), (w3, b3), (w4, b4) = params
    out_dim = w4.shape[1]

    # Lane-pad every contracted / produced feature dim to a multiple of 128.
    # Zero padding is exact: padded columns contribute 0 and leaky_relu(0) == 0.
    dp   = _round_up(d, LANE)
    h1p  = _round_up(w1.shape[1], LANE)
    h2p  = _round_up(w2.shape[1], LANE)
    h3p  = _round_up(w3.shape[1], LANE)
    outp = _round_up(out_dim, LANE)

    bf16, f32 = jnp.bfloat16, jnp.float32
    w1p = _pad2(w1, dp,  h1p, bf16);  b1p = _pad2(b1, 1, h1p, f32)
    w2p = _pad2(w2, h1p, h2p, bf16);  b2p = _pad2(b2, 1, h2p, f32)
    w3p = _pad2(w3, h2p, h3p, bf16);  b3p = _pad2(b3, 1, h3p, f32)
    w4p = _pad2(w4, h3p, outp, bf16); b4p = _pad2(b4, 1, outp, f32)

    # Batch tiling.
    tm_sel = _choose_tm(n, tm)
    n_pad = _round_up(n, tm_sel)
    xp = jnp.pad(x2d, ((0, n_pad - n), (0, dp - d))).astype(bf16)

    grid = (n_pad // tm_sel,)

    def resident(a):
        # Weights/biases: constant index_map -> VMEM-resident, single-buffered.
        return pl.BlockSpec(a.shape, lambda i: (0, 0), pipeline_mode=pl.Buffered(1))

    w_elems = dp * h1p + h1p * h2p + h2p * h3p + h3p * outp
    b_elems = h1p + h2p + h3p + outp

    flops = 2 * n_pad * w_elems
    bytes_accessed = (n_pad * dp * 2          # x (bf16)
                      + w_elems * 2           # W1..W4 (bf16)
                      + b_elems * 4           # biases (f32)
                      + n_pad * outp * 2)     # output (bf16)

    # Approximate VMEM footprint: x/out double-buffered, weights single-buffered.
    footprint = (2 * tm_sel * dp * 2) + (2 * tm_sel * outp * 2) \
                + w_elems * 2 + b_elems * 4
    compiler_kwargs = dict(dimension_semantics=("parallel",))
    if footprint > 28 * 1024 * 1024:
        # TODO(synk): for very large input_dim, add a K-tiling grid axis with an f32
        # accumulator instead of relying on a raised scoped-VMEM limit (v7x: 64 MiB).
        compiler_kwargs["vmem_limit_bytes"] = min(int(footprint * 5 // 4),
                                                  100 * 1024 * 1024)

    out = pl.pallas_call(
        mlp_kernel,
        out_shape=jax.ShapeDtypeStruct((n_pad, outp), bf16),
        grid=grid,
        in_specs=[
            pl.BlockSpec((tm_sel, dp), lambda i: (i, 0)),
            resident(w1p), resident(b1p),
            resident(w2p), resident(b2p),
            resident(w3p), resident(b3p),
            resident(w4p), resident(b4p),
        ],
        out_specs=pl.BlockSpec((tm_sel, outp), lambda i: (i, 0)),
        compiler_params=pltpu.CompilerParams(**compiler_kwargs),
        cost_estimate=pl.CostEstimate(flops=flops, transcendentals=0,
                                      bytes_accessed=bytes_accessed),
    )(xp, w1p, b1p, w2p, b2p, w3p, b3p, w4p, b4p)

    return out[:n, :out_dim].astype(jnp.float32)


def init_params(key, input_dim, output_size, architecture=(512, 32, 16)):
    """nn.Linear-style init U(-1/sqrt(fan_in), +1/sqrt(fan_in)); W stored (in, out)."""
    sizes = [input_dim, *architecture, output_size]
    params = []
    for fan_in, fan_out in zip(sizes[:-1], sizes[1:]):
        key, kw, kb = jax.random.split(key, 3)
        bound = 1.0 / (fan_in ** 0.5)
        w = jax.random.uniform(kw, (fan_in, fan_out), jnp.float32, -bound, bound)
        b = jax.random.uniform(kb, (1, fan_out), jnp.float32, -bound, bound)
        params.append((w, b))
    return params


def reference_forward(x, params):
    """Pure f32 reference (PyTorch semantics)."""
    n = x.shape[0]
    h = x.reshape(n, -1).astype(jnp.float32)
    slopes = [0.2, 0.1, 0.1, None]
    for (w, b), s in zip(params, slopes):
        h = h @ w + b
        if s is not None:
            h = jnp.where(h > 0, h, s * h)
    return h


if __name__ == "__main__":
    key = jax.random.PRNGKey(0)
    k_x, k_p = jax.random.split(key)

    # batch=2, C=4, H=W=16 -> input_dim=1024, output_size=8
    batch, C, H, W = 2, 4, 16, 16
    input_dim = C * H * W
    output_size = 8

    x = jax.random.normal(k_x, (batch, C, H, W), jnp.float32)
    params = init_params(k_p, input_dim, output_size)

    out = fully_connected_forward(x, params)
    out = jax.block_until_ready(out)

    ref = reference_forward(x, params)
    assert out.shape == (batch, output_size), out.shape
    # bf16 matmul operands (f32 accumulation) + bf16 output writeback -> loosened tol.
    assert jnp.allclose(out, ref, atol=2e-2, rtol=2e-2), "mismatch vs JAX reference"

    print("KERNEL_OK")
</pallas_src>

<mosaic_0001>
module attributes {stable_mosaic.version = 11 : i64} {
  func.func @mlp_kernel(%arg0: i32, %arg1: memref<8x1024xbf16, #tpu.memory_space<vmem>>, %arg2: memref<1024x512xbf16, #tpu.memory_space<vmem>>, %arg3: memref<1x512xf32, #tpu.memory_space<vmem>>, %arg4: memref<512x128xbf16, #tpu.memory_space<vmem>>, %arg5: memref<1x128xf32, #tpu.memory_space<vmem>>, %arg6: memref<128x128xbf16, #tpu.memory_space<vmem>>, %arg7: memref<1x128xf32, #tpu.memory_space<vmem>>, %arg8: memref<128x128xbf16, #tpu.memory_space<vmem>>, %arg9: memref<1x128xf32, #tpu.memory_space<vmem>>, %arg10: memref<8x128xbf16, #tpu.memory_space<vmem>>) attributes {dimension_semantics = [#tpu.dimension_semantics<parallel>], iteration_bounds = array<i64: 1>, scalar_prefetch = 0 : i64, scratch_operands = 0 : i64, tpu.core_type = #tpu.core_type<tc>, window_params = [{transform_indices = @transform_0, window_bounds = array<i64: 8, 1024>}, {pipeline_mode = #tpu.pipeline_mode<synchronous>, transform_indices = @transform_1, window_bounds = array<i64: 1024, 512>}, {pipeline_mode = #tpu.pipeline_mode<synchronous>, transform_indices = @transform_2, window_bounds = array<i64: 1, 512>}, {pipeline_mode = #tpu.pipeline_mode<synchronous>, transform_indices = @transform_3, window_bounds = array<i64: 512, 128>}, {pipeline_mode = #tpu.pipeline_mode<synchronous>, transform_indices = @transform_4, window_bounds = array<i64: 1, 128>}, {pipeline_mode = #tpu.pipeline_mode<synchronous>, transform_indices = @transform_5, window_bounds = array<i64: 128, 128>}, {pipeline_mode = #tpu.pipeline_mode<synchronous>, transform_indices = @transform_6, window_bounds = array<i64: 1, 128>}, {pipeline_mode = #tpu.pipeline_mode<synchronous>, transform_indices = @transform_7, window_bounds = array<i64: 128, 128>}, {pipeline_mode = #tpu.pipeline_mode<synchronous>, transform_indices = @transform_8, window_bounds = array<i64: 1, 128>}, {transform_indices = @transform_9, window_bounds = array<i64: 8, 128>}]} {
    %c0 = arith.constant 0 : index
    %c0_0 = arith.constant 0 : index
    %0 = vector.load %arg1[%c0, %c0_0] : memref<8x1024xbf16, #tpu.memory_space<vmem>>, vector<8x1024xbf16>
    %c0_1 = arith.constant 0 : index
    %c0_2 = arith.constant 0 : index
    %1 = vector.load %arg2[%c0_1, %c0_2] : memref<1024x512xbf16, #tpu.memory_space<vmem>>, vector<1024x512xbf16>
    %cst = arith.constant dense<0.000000e+00> : vector<8x512xf32>
    %2 = tpu.matmul %0, %1, %cst {dimension_numbers = #tpu.dot_dimension_numbers<[1], [0], [0], [1], [0, 0, 1, 1], [], []>} : vector<8x1024xbf16>, vector<1024x512xbf16>, vector<8x512xf32> -> vector<8x512xf32>
    %c0_3 = arith.constant 0 : index
    %c0_4 = arith.constant 0 : index
    %3 = vector.load %arg3[%c0_3, %c0_4] : memref<1x512xf32, #tpu.memory_space<vmem>>, vector<1x512xf32>
    %4 = vector.broadcast %3 : vector<1x512xf32> to vector<8x512xf32>
    %5 = arith.addf %2, %4 : vector<8x512xf32>
    %cst_5 = arith.constant 0.000000e+00 : f32
    %6 = vector.broadcast %cst_5 : f32 to vector<8x512xf32>
    %7 = arith.cmpf ogt, %5, %6 : vector<8x512xf32>
    %cst_6 = arith.constant 2.000000e-01 : f32
    %8 = vector.broadcast %cst_6 : f32 to vector<8x512xf32>
    %9 = arith.mulf %8, %5 : vector<8x512xf32>
    %10 = arith.select %7, %5, %9 : vector<8x512xi1>, vector<8x512xf32>
    %11 = arith.truncf %10 : vector<8x512xf32> to vector<8x512xbf16>
    %c0_7 = arith.constant 0 : index
    %c0_8 = arith.constant 0 : index
    %12 = vector.load %arg4[%c0_7, %c0_8] : memref<512x128xbf16, #tpu.memory_space<vmem>>, vector<512x128xbf16>
    %cst_9 = arith.constant dense<0.000000e+00> : vector<8x128xf32>
    %13 = tpu.matmul %11, %12, %cst_9 {dimension_numbers = #tpu.dot_dimension_numbers<[1], [0], [0], [1], [0, 0, 1, 1], [], []>} : vector<8x512xbf16>, vector<512x128xbf16>, vector<8x128xf32> -> vector<8x128xf32>
    %c0_10 = arith.constant 0 : index
    %c0_11 = arith.constant 0 : index
    %14 = vector.load %arg5[%c0_10, %c0_11] : memref<1x128xf32, #tpu.memory_space<vmem>>, vector<1x128xf32>
    %15 = vector.broadcast %14 : vector<1x128xf32> to vector<8x128xf32>
    %16 = arith.addf %13, %15 : vector<8x128xf32>
    %cst_12 = arith.constant 0.000000e+00 : f32
    %17 = vector.broadcast %cst_12 : f32 to vector<8x128xf32>
    %18 = arith.cmpf ogt, %16, %17 : vector<8x128xf32>
    %cst_13 = arith.constant 1.000000e-01 : f32
    %19 = vector.broadcast %cst_13 : f32 to vector<8x128xf32>
    %20 = arith.mulf %19, %16 : vector<8x128xf32>
    %21 = arith.select %18, %16, %20 : vector<8x128xi1>, vector<8x128xf32>
    %22 = arith.truncf %21 : vector<8x128xf32> to vector<8x128xbf16>
    %c0_14 = arith.constant 0 : index
    %c0_15 = arith.constant 0 : index
    %23 = vector.load %arg6[%c0_14, %c0_15] : memref<128x128xbf16, #tpu.memory_space<vmem>>, vector<128x128xbf16>
    %cst_16 = arith.constant dense<0.000000e+00> : vector<8x128xf32>
    %24 = tpu.matmul %22, %23, %cst_16 {dimension_numbers = #tpu.dot_dimension_numbers<[1], [0], [0], [1], [0, 0, 1, 1], [], []>} : vector<8x128xbf16>, vector<128x128xbf16>, vector<8x128xf32> -> vector<8x128xf32>
    %c0_17 = arith.constant 0 : index
    %c0_18 = arith.constant 0 : index
    %25 = vector.load %arg7[%c0_17, %c0_18] : memref<1x128xf32, #tpu.memory_space<vmem>>, vector<1x128xf32>
    %26 = vector.broadcast %25 : vector<1x128xf32> to vector<8x128xf32>
    %27 = arith.addf %24, %26 : vector<8x128xf32>
    %cst_19 = arith.constant 0.000000e+00 : f32
    %28 = vector.broadcast %cst_19 : f32 to vector<8x128xf32>
    %29 = arith.cmpf ogt, %27, %28 : vector<8x128xf32>
    %cst_20 = arith.constant 1.000000e-01 : f32
    %30 = vector.broadcast %cst_20 : f32 to vector<8x128xf32>
    %31 = arith.mulf %30, %27 : vector<8x128xf32>
    %32 = arith.select %29, %27, %31 : vector<8x128xi1>, vector<8x128xf32>
    %33 = arith.truncf %32 : vector<8x128xf32> to vector<8x128xbf16>
    %c0_21 = arith.constant 0 : index
    %c0_22 = arith.constant 0 : index
    %34 = vector.load %arg8[%c0_21, %c0_22] : memref<128x128xbf16, #tpu.memory_space<vmem>>, vector<128x128xbf16>
    %cst_23 = arith.constant dense<0.000000e+00> : vector<8x128xf32>
    %35 = tpu.matmul %33, %34, %cst_23 {dimension_numbers = #tpu.dot_dimension_numbers<[1], [0], [0], [1], [0, 0, 1, 1], [], []>} : vector<8x128xbf16>, vector<128x128xbf16>, vector<8x128xf32> -> vector<8x128xf32>
    %c0_24 = arith.constant 0 : index
    %c0_25 = arith.constant 0 : index
    %36 = vector.load %arg9[%c0_24, %c0_25] : memref<1x128xf32, #tpu.memory_space<vmem>>, vector<1x128xf32>
    %37 = vector.broadcast %36 : vector<1x128xf32> to vector<8x128xf32>
    %38 = arith.addf %35, %37 : vector<8x128xf32>
    %39 = arith.truncf %38 : vector<8x128xf32> to vector<8x128xbf16>
    %c0_26 = arith.constant 0 : index
    %c0_27 = arith.constant 0 : index
    %40 = vector.load %arg10[%c0_26, %c0_27] : memref<8x128xbf16, #tpu.memory_space<vmem>>, vector<8x128xbf16>
    tpu.vector_store %arg10[%c0_26, %c0_27], %39 {strides = array<i32>} : memref<8x128xbf16, #tpu.memory_space<vmem>>, vector<8x128xbf16>,
    return
  }
  func.func @transform_0(%arg0: i32) -> (i32, i32) {
    %c0_i32 = arith.constant 0 : i32
    %c0_i32_0 = arith.constant 0 : i32
    return %arg0, %c0_i32 : i32, i32
  }
  func.func @transform_1(%arg0: i32) -> (i32, i32) {
    %c0_i32 = arith.constant 0 : i32
    %c0_i32_0 = arith.constant 0 : i32
    %c0_i32_1 = arith.constant 0 : i32
    return %c0_i32, %c0_i32_0 : i32, i32
  }
  func.func @transform_2(%arg0: i32) -> (i32, i32) {
    %c0_i32 = arith.constant 0 : i32
    %c0_i32_0 = arith.constant 0 : i32
    %c0_i32_1 = arith.constant 0 : i32
    return %c0_i32, %c0_i32_0 : i32, i32
  }
  func.func @transform_3(%arg0: i32) -> (i32, i32) {
    %c0_i32 = arith.constant 0 : i32
    %c0_i32_0 = arith.constant 0 : i32
    %c0_i32_1 = arith.constant 0 : i32
    return %c0_i32, %c0_i32_0 : i32, i32
  }
  func.func @transform_4(%arg0: i32) -> (i32, i32) {
    %c0_i32 = arith.constant 0 : i32
    %c0_i32_0 = arith.constant 0 : i32
    %c0_i32_1 = arith.constant 0 : i32
    return %c0_i32, %c0_i32_0 : i32, i32
  }
  func.func @transform_5(%arg0: i32) -> (i32, i32) {
    %c0_i32 = arith.constant 0 : i32
    %c0_i32_0 = arith.constant 0 : i32
    %c0_i32_1 = arith.constant 0 : i32
    return %c0_i32, %c0_i32_0 : i32, i32
  }
  func.func @transform_6(%arg0: i32) -> (i32, i32) {
    %c0_i32 = arith.constant 0 : i32
    %c0_i32_0 = arith.constant 0 : i32
    %c0_i32_1 = arith.constant 0 : i32
    return %c0_i32, %c0_i32_0 : i32, i32
  }
  func.func @transform_7(%arg0: i32) -> (i32, i32) {
    %c0_i32 = arith.constant 0 : i32
    %c0_i32_0 = arith.constant 0 : i32
    %c0_i32_1 = arith.constant 0 : i32
    return %c0_i32, %c0_i32_0 : i32, i32
  }
  func.func @transform_8(%arg0: i32) -> (i32, i32) {
    %c0_i32 = arith.constant 0 : i32
    %c0_i32_0 = arith.constant 0 : i32
    %c0_i32_1 = arith.constant 0 : i32
    return %c0_i32, %c0_i32_0 : i32, i32
  }
  func.func @transform_9(%arg0: i32) -> (i32, i32) {
    %c0_i32 = arith.constant 0 : i32
    %c0_i32_0 = arith.constant 0 : i32
    return %arg0, %c0_i32 : i32, i32
  }
}

</mosaic_0001>

<bundles_post_ra>
// kernel: tpu_custom_call.1
= control target key start
LH: loop header
LB: loop body
LE: loop exit
PB: predicated region body
PF: predicated region fallthrough
CT: control target
= control target key end

     0   :  { %14 = vsyncpa [#allocation3], 0  ;;  %s3854_s0 = inlined_call_operand.hbm [shape: bf16[8,1024], index: 0, kind: input, shape index: {}]   ;;  %s3855_s1 = inlined_call_operand.hbm [shape: bf16[1024,512], index: 1, kind: input, shape index: {}]   ;;  %s3856_s2 = inlined_call_operand.vmem [shape: f32[1,512], index: 2, kind: input, shape index: {}]   ;;  %s3857_s3 = inlined_call_operand.hbm [shape: bf16[512,128], index: 3, kind: input, shape index: {}]   ;;  %s3858_s4 = inlined_call_operand.vmem [shape: f32[1,128], index: 4, kind: input, shape index: {}]   ;;  %s3859_s5 = inlined_call_operand.hbm [shape: bf16[128,128], index: 5, kind: input, shape index: {}]   ;;  %s3860_s6 = inlined_call_operand.vmem [shape: f32[1,128], index: 6, kind: input, shape index: {}]   ;;  %s3861_s7 = inlined_call_operand.hbm [shape: bf16[128,128], index: 7, kind: input, shape index: {}]   ;;  %s3862_s8 = inlined_call_operand.vmem [shape: f32[1,128], index: 8, kind: input, shape index: {}]   ;;  %s3863_s9 = inlined_call_operand.hbm [shape: bf16[8,128], index: 9, kind: output, shape index: {}]  }
   0x1   :  { %15 = vsyncpa [#allocation6], 0 }
   0x2   :  { %16 = vsyncpa [#allocation9], 0 }
   0x3   :  { %17 = vsyncpa [#allocation4], 0  ;;  %s3663_s30 = smov [#allocation5]   ;;  %s3523_s13 = scalar_lea.hbm %s3855_s1, 32768 }
   0x4   :  { %s33_s10 = sshll.u32 %s3663_s30, 4  ;;  %p3524_p0 = scmp.ne.s32.totalorder %s3855_s1, %s3523_s13  ;;  %s34_s10 = int_to_ptr.vmem [resolvable:$true] %s33_s10 }
   0x5   :  { %p3527_p1 = scmp.lt.u32.totalorder %s3523_s13, %s3855_s1 }
   0x7   :  { %p3529_p2 = pnand %p3527_p1, %p3524_p0 }
   0x9   :  { %3532 = shalt.err (!%p3529_p2)
}
   0xa   :  { %s3533_s18 = scalar_lea.vmem %s34_s10, 32768  ;;  %p3538_p4 = scmp.lt.s32.totalorder %s34_s10, %s34_s10 }
   0xb   :  { %p3534_p3 = scmp.ne.s32.totalorder %s34_s10, %s3533_s18  ;;  %p3539_p5 = scmp.lt.s32.totalorder %s3533_s18, %s3533_s18 }
   0xd   :  { %p3540_p6 = por %p3539_p5, %p3538_p4 }
   0xf   :  { %p3541_p7 = pnand %p3540_p6, %p3534_p3 }
  0x11   :  { %3544 = shalt.err (!%p3541_p7)
}
  0x12   :  { %s3664_s19 = smov 256   ;;  %s3665_s20 = smov 16  }
  0x13   :  { %39 = dma.hbm_to_vmem [thread:$0]  %s3855_s1, 32768, %s34_s10, [#allocation6], %s3664_s19, %s3664_s19, %s3665_s20  }
  0x14   :  { %s3666_s23 = smov [#allocation8]   ;;  %s3667_s25 = smov [#allocation2]  }
  0x15   :  { %s61_s24 = sshll.u32 %s3666_s23, 4  ;;  %s24_s26 = sshll.u32 %s3667_s25, 4  ;;  %s62_s24 = int_to_ptr.vmem [resolvable:$true] %s61_s24  ;;  %s25_s26 = int_to_ptr.vmem [resolvable:$true] %s24_s26 }
  0x16   :  { %s3545_s29 = scalar_lea.hbm %s3859_s5, 1024 }
  0x17   :  { %p3546_p8 = scmp.ne.s32.totalorder %s3859_s5, %s3545_s29  ;;  %p3549_p9 = scmp.lt.u32.totalorder %s3545_s29, %s3859_s5 }
  0x19   :  { %p3551_p10 = pnand %p3549_p9, %p3546_p8 }
  0x1b   :  { %3554 = shalt.err (!%p3551_p10)
}
  0x1c   :  { %s3555_s1 = scalar_lea.vmem %s62_s24, 1024  ;;  %p3560_p12 = scmp.lt.s32.totalorder %s62_s24, %s62_s24 }
  0x1d   :  { %p3556_p11 = scmp.ne.s32.totalorder %s62_s24, %s3555_s1  ;;  %p3561_p13 = scmp.lt.s32.totalorder %s3555_s1, %s3555_s1 }
  0x1f   :  { %p3562_p0 = por %p3561_p13, %p3560_p12 }
  0x21   :  { %p3563_p1 = pnand %p3562_p0, %p3556_p11 }
  0x23   :  { %3566 = shalt.err (!%p3563_p1)
}
  0x24   :  { %s3668_s10 = smov 64   ;;  %s3669_s14 = smov 4  }
  0x25   :  { %67 = dma.hbm_to_vmem [thread:$0]  %s3859_s5, 1024, %s62_s24, [#allocation9], %s3668_s10, %s3668_s10, %s3669_s14  }
  0x26   :  { %s3567_s19 = scalar_lea.hbm %s3854_s0, 512 }
  0x27   :  { %p3568_p2 = scmp.ne.s32.totalorder %s3854_s0, %s3567_s19  ;;  %p3571_p3 = scmp.lt.u32.totalorder %s3567_s19, %s3854_s0 }
  0x29   :  { %p3573_p4 = pnand %p3571_p3, %p3568_p2 }
  0x2b   :  { %3576 = shalt.err (!%p3573_p4)
}
  0x2c   :  { %s3577_s25 = scalar_lea.vmem %s25_s26, 512  ;;  %p3582_p6 = scmp.lt.s32.totalorder %s25_s26, %s25_s26 }
  0x2d   :  { %p3578_p5 = scmp.ne.s32.totalorder %s25_s26, %s3577_s25  ;;  %p3583_p7 = scmp.lt.s32.totalorder %s3577_s25, %s3577_s25 }
  0x2f   :  { %p3584_p8 = por %p3583_p7, %p3582_p6 }
  0x31   :  { %p3585_p9 = pnand %p3584_p8, %p3578_p5 }
  0x33   :  { %3588 = shalt.err (!%p3585_p9)
}
  0x34   :  { %27 = dma.hbm_to_vmem [thread:$0]  %s3854_s0, 512, %s25_s26, [#allocation3]  }
  0x35   :  { %s3670_s27 = smov [#allocation7]   ;;  %s3671_s29 = smov [#allocation10]  }
  0x36   :  { %s47_s28 = sshll.u32 %s3670_s27, 4  ;;  %s75_s30 = sshll.u32 %s3671_s29, 4  ;;  %s48_s28 = int_to_ptr.vmem [resolvable:$true] %s47_s28  ;;  %s76_s30 = int_to_ptr.vmem [resolvable:$true] %s75_s30 }
  0x37   :  { %s3589_s13 = scalar_lea.hbm %s3857_s3, 4096 }
  0x38   :  { %p3590_p10 = scmp.ne.s32.totalorder %s3857_s3, %s3589_s13  ;;  %p3593_p11 = scmp.lt.u32.totalorder %s3589_s13, %s3857_s3 }
  0x3a   :  { %p3595_p12 = pnand %p3593_p11, %p3590_p10 }
  0x3c   :  { %3598 = shalt.err (!%p3595_p12)
}
  0x3d   :  { %s3599_s0 = scalar_lea.vmem %s48_s28, 4096  ;;  %p3604_p0 = scmp.lt.s32.totalorder %s48_s28, %s48_s28 }
  0x3e   :  { %p3600_p13 = scmp.ne.s32.totalorder %s48_s28, %s3599_s0  ;;  %p3605_p1 = scmp.lt.s32.totalorder %s3599_s0, %s3599_s0 }
  0x40   :  { %p3606_p2 = por %p3605_p1, %p3604_p0 }
  0x42   :  { %p3607_p3 = pnand %p3606_p2, %p3600_p13 }
  0x44   :  { %3610 = shalt.err (!%p3607_p3)
}
  0x45   :  { %53 = dma.hbm_to_vmem [thread:$0]  %s3857_s3, 4096, %s48_s28, [#allocation6], %s3668_s10, %s3668_s10, %s3669_s14  }
  0x46   :  { %s3611_s21 = scalar_lea.hbm %s3861_s7, 1024 }
  0x47   :  { %p3612_p4 = scmp.ne.s32.totalorder %s3861_s7, %s3611_s21  ;;  %p3615_p5 = scmp.lt.u32.totalorder %s3611_s21, %s3861_s7 }
  0x49   :  { %p3617_p6 = pnand %p3615_p5, %p3612_p4 }
  0x4b   :  { %3620 = shalt.err (!%p3617_p6)
}
  0x4c   :  { %s3621_s24 = scalar_lea.vmem %s76_s30, 1024  ;;  %p3626_p8 = scmp.lt.s32.totalorder %s76_s30, %s76_s30 }
  0x4d   :  { %p3622_p7 = scmp.ne.s32.totalorder %s76_s30, %s3621_s24  ;;  %p3627_p9 = scmp.lt.s32.totalorder %s3621_s24, %s3621_s24 }
  0x4f   :  { %p3628_p10 = por %p3627_p9, %p3626_p8 }
  0x51   :  { %p3629_p11 = pnand %p3628_p10, %p3622_p7 }
  0x53   :  { %3632 = shalt.err (!%p3629_p11)
}
  0x54   :  { %81 = dma.hbm_to_vmem [thread:$0]  %s3861_s7, 1024, %s76_s30, [#allocation9], %s3668_s10, %s3668_s10, %s3669_s14  }
  0x55   :  { %3655 = dma.done.wait [#allocation3], 512  }
  0x56   :  { %3656 = vsyncadd [#allocation3], 4294966784 }
  0x57   :  { %3657 = dma.done.wait [#allocation6], 36864  }
  0x58   :  { %3658 = vsyncadd [#allocation6], 4294930432 }
  0x59   :  { %3659 = dma.done.wait [#allocation9], 2048  }
  0x5a   :  { %3660 = vsyncadd [#allocation9], 4294965248  ;;  %v3083_v0 = vld [vmem:[#allocation5 + $0x4] ss:$16 sps:$4 sm:$0xff]   ;;  %v3085_v1 = vld [vmem:[#allocation5 + $0xc] ss:$16 sps:$4 sm:$0xff]  }
  0x5b   :  { %1690 = vmatprep.subr.bf16.mxu0 %v3083_v0  ;;  %v3087_v2 = vld [vmem:[#allocation5] ss:$16 sps:$4 sm:$0xff]   ;;  %v3088_v3 = vld [vmem:[#allocation5 + $0x8] ss:$16 sps:$4 sm:$0xff]   ;;  %1854 = vmatprep.subr.bf16.mxu1 %v3085_v1  ;;  %v3089_v4 = vld [vmem:[#allocation5 + $0x24] ss:$16 sps:$4 sm:$0xff]  }
  0x5c   :  { %1691 = vmatpush1.bf16.msra.mxu0 %v3087_v2  ;;  %1855 = vmatpush1.bf16.msra.mxu1 %v3088_v3  ;;  %v3091_v5 = vld [vmem:[#allocation5 + $0x2c] ss:$16 sps:$4 sm:$0xff]   ;;  %v3093_v6 = vld [vmem:[#allocation5 + $0x20] ss:$16 sps:$4 sm:$0xff]   ;;  %v3094_v7 = vld [vmem:[#allocation5 + $0x28] ss:$16 sps:$4 sm:$0xff]  }
  0x5d   :  { %1692 = vmatprep.subr.bf16.mxu0 %v3089_v4  ;;  %1856 = vmatprep.subr.bf16.mxu1 %v3091_v5  ;;  %v3095_v8 = vld [vmem:[#allocation5 + $0x44] ss:$16 sps:$4 sm:$0xff]   ;;  %v3097_v9 = vld [vmem:[#allocation5 + $0x4c] ss:$16 sps:$4 sm:$0xff]   ;;  %v3099_v10 = vld [vmem:[#allocation5 + $0x40] ss:$16 sps:$4 sm:$0xff]  }
  0x5e   :  { %v3100_v11 = vld [vmem:[#allocation5 + $0x48] ss:$16 sps:$4 sm:$0xff]   ;;  %v3101_v12 = vld [vmem:[#allocation5 + $0x64] ss:$16 sps:$4 sm:$0xff]   ;;  %v3103_v13 = vld [vmem:[#allocation5 + $0x6c] ss:$16 sps:$4 sm:$0xff]  }
  0x5f   :  { %v3105_v14 = vld [vmem:[#allocation5 + $0x60] ss:$16 sps:$4 sm:$0xff]   ;;  %v3106_v15 = vld [vmem:[#allocation5 + $0x68] ss:$16 sps:$4 sm:$0xff]   ;;  %v3107_v16 = vld [vmem:[#allocation5 + $0x84] ss:$16 sps:$4 sm:$0xff]  }
  0x60   :  { %1693 = vmatpush1.bf16.msra.mxu0 %v3093_v6  ;;  %1857 = vmatpush1.bf16.msra.mxu1 %v3094_v7  ;;  %v3109_v17 = vld [vmem:[#allocation5 + $0x8c] ss:$16 sps:$4 sm:$0xff]   ;;  %v3111_v18 = vld [vmem:[#allocation5 + $0x80] ss:$16 sps:$4 sm:$0xff]   ;;  %v3112_v19 = vld [vmem:[#allocation5 + $0x88] ss:$16 sps:$4 sm:$0xff]  }
  0x61   :  { %1694 = vmatprep.subr.bf16.mxu0 %v3095_v8  ;;  %1858 = vmatprep.subr.bf16.mxu1 %v3097_v9  ;;  %v3113_v20 = vld [vmem:[#allocation5 + $0xa4] ss:$16 sps:$4 sm:$0xff]   ;;  %v3115_v21 = vld [vmem:[#allocation5 + $0xac] ss:$16 sps:$4 sm:$0xff]   ;;  %v3117_v22 = vld [vmem:[#allocation5 + $0xa0] ss:$16 sps:$4 sm:$0xff]  }
  0x62   :  { %v3118_v23 = vld [vmem:[#allocation5 + $0xa8] ss:$16 sps:$4 sm:$0xff]   ;;  %v3119_v24 = vld [vmem:[#allocation5 + $0xc4] ss:$16 sps:$4 sm:$0xff]   ;;  %v3121_v25 = vld [vmem:[#allocation5 + $0xcc] ss:$16 sps:$4 sm:$0xff]  }
  0x63   :  { %v3123_v26 = vld [vmem:[#allocation5 + $0xc0] ss:$16 sps:$4 sm:$0xff]   ;;  %v3124_v27 = vld [vmem:[#allocation5 + $0xc8] ss:$16 sps:$4 sm:$0xff]   ;;  %v3125_v28 = vld [vmem:[#allocation5 + $0xe4] ss:$16 sps:$4 sm:$0xff]  }
  0x64   :  { %1695 = vmatpush1.bf16.msra.mxu0 %v3099_v10  ;;  %1859 = vmatpush1.bf16.msra.mxu1 %v3100_v11  ;;  %v3127_v29 = vld [vmem:[#allocation5 + $0xec] ss:$16 sps:$4 sm:$0xff]   ;;  %v3129_v30 = vld [vmem:[#allocation5 + $0xe0] ss:$16 sps:$4 sm:$0xff]   ;;  %v3130_v31 = vld [vmem:[#allocation5 + $0xe8] ss:$16 sps:$4 sm:$0xff]  }
  0x65   :  { %1696 = vmatprep.subr.bf16.mxu0 %v3101_v12  ;;  %1860 = vmatprep.subr.bf16.mxu1 %v3103_v13  ;;  %v3131_v32 = vld [vmem:[#allocation5 + $0x104] ss:$16 sps:$4 sm:$0xff]   ;;  %v3133_v33 = vld [vmem:[#allocation5 + $0x10c] ss:$16 sps:$4 sm:$0xff]   ;;  %v3135_v34 = vld [vmem:[#allocation5 + $0x100] ss:$16 sps:$4 sm:$0xff]  }
  0x66   :  { %v3136_v35 = vld [vmem:[#allocation5 + $0x108] ss:$16 sps:$4 sm:$0xff]   ;;  %v3137_v36 = vld [vmem:[#allocation5 + $0x124] ss:$16 sps:$4 sm:$0xff]   ;;  %v3139_v37 = vld [vmem:[#allocation5 + $0x12c] ss:$16 sps:$4 sm:$0xff]  }
  0x67   :  { %v3141_v38 = vld [vmem:[#allocation5 + $0x120] ss:$16 sps:$4 sm:$0xff]   ;;  %v3142_v39 = vld [vmem:[#allocation5 + $0x128] ss:$16 sps:$4 sm:$0xff]   ;;  %v3143_v40 = vld [vmem:[#allocation5 + $0x144] ss:$16 sps:$4 sm:$0xff]  }
  0x68   :  { %1697 = vmatpush1.bf16.msra.mxu0 %v3105_v14  ;;  %1861 = vmatpush1.bf16.msra.mxu1 %v3106_v15  ;;  %v3145_v41 = vld [vmem:[#allocation5 + $0x14c] ss:$16 sps:$4 sm:$0xff]   ;;  %v3147_v42 = vld [vmem:[#allocation5 + $0x140] ss:$16 sps:$4 sm:$0xff]   ;;  %v3148_v43 = vld [vmem:[#allocation5 + $0x148] ss:$16 sps:$4 sm:$0xff]  }
  0x69   :  { %1698 = vmatprep.subr.bf16.mxu0 %v3107_v16  ;;  %1862 = vmatprep.subr.bf16.mxu1 %v3109_v17  ;;  %v3149_v44 = vld [vmem:[#allocation5 + $0x164] ss:$16 sps:$4 sm:$0xff]   ;;  %v3151_v45 = vld [vmem:[#allocation5 + $0x16c] ss:$16 sps:$4 sm:$0xff]   ;;  %v3153_v47 = vld [vmem:[#allocation5 + $0x160] ss:$16 sps:$4 sm:$0xff]  }
  0x6a   :  { %v100_v46 = vld [vmem:[#allocation2] sm:$0xff]  ;;  %v3154_v49 = vld [vmem:[#allocation5 + $0x168] ss:$16 sps:$4 sm:$0xff]   ;;  %v3157_v51 = vld [vmem:[#allocation5 + $0x18c] ss:$16 sps:$4 sm:$0xff]   ;;  %vm3673_vm4 = vmmov 0  }
  0x6b   :  { %v2627_v48 = vcombine.high %v100_v46, %v100_v46  ;;  %v3155_v50 = vld [vmem:[#allocation5 + $0x184] ss:$16 sps:$4 sm:$0xff]   ;;  %v3159_v52 = vld [vmem:[#allocation5 + $0x180] ss:$16 sps:$4 sm:$0xff]   ;;  %v3160_v53 = vld [vmem:[#allocation5 + $0x188] ss:$16 sps:$4 sm:$0xff]   ;;  %v2626_v4 = vcombine.low %v100_v46, %v100_v46 }
  0x6c   :  { %1699 = vmatpush1.bf16.msra.mxu0 %v3111_v18  ;;  %1863 = vmatpush1.bf16.msra.mxu1 %v3112_v19  ;;  %v3161_v54 = vld [vmem:[#allocation5 + $0x1a4] ss:$16 sps:$4 sm:$0xff]   ;;  %v3163_v55 = vld [vmem:[#allocation5 + $0x1ac] ss:$16 sps:$4 sm:$0xff]   ;;  %v3165_v56 = vld [vmem:[#allocation5 + $0x1a0] ss:$16 sps:$4 sm:$0xff]  }
  0x6d   :  { %1700 = vmatprep.subr.bf16.mxu0 %v3113_v20  ;;  %1864 = vmatprep.subr.bf16.mxu1 %v3115_v21  ;;  %v3166_v57 = vld [vmem:[#allocation5 + $0x1a8] ss:$16 sps:$4 sm:$0xff]   ;;  %v3167_v58 = vld [vmem:[#allocation5 + $0x1c4] ss:$16 sps:$4 sm:$0xff]   ;;  %v3169_v59 = vld [vmem:[#allocation5 + $0x1cc] ss:$16 sps:$4 sm:$0xff]  }
  0x6e   :  { %1722 = vmatprep.mubr.bf16.mxu0 %v2627_v48  ;;  %1886 = vmatprep.mubr.bf16.mxu1 %v2627_v48  ;;  %v3171_v60 = vld [vmem:[#allocation5 + $0x1c0] ss:$16 sps:$4 sm:$0xff]   ;;  %v3172_v61 = vld [vmem:[#allocation5 + $0x1c8] ss:$16 sps:$4 sm:$0xff]   ;;  %v3173_v62 = vld [vmem:[#allocation5 + $0x1e4] ss:$16 sps:$4 sm:$0xff]  }
  0x6f   :  { %v3175_v63 = vld [vmem:[#allocation5 + $0x1ec] ss:$16 sps:$4 sm:$0xff]   ;;  %v3177_v0 = vld [vmem:[#allocation5 + $0x1e0] ss:$16 sps:$4 sm:$0xff]   ;;  %v3178_v1 = vld [vmem:[#allocation5 + $0x1e8] ss:$16 sps:$4 sm:$0xff]  }
  0x70   :  { %1701 = vmatpush1.bf16.msra.mxu0 %v3117_v22  ;;  %1865 = vmatpush1.bf16.msra.mxu1 %v3118_v23  ;;  %v3183_v2 = vld [vmem:[#allocation5 + $0x204] ss:$16 sps:$4 sm:$0xff]   ;;  %v3186_v3 = vld [vmem:[#allocation5 + $0x20c] ss:$16 sps:$4 sm:$0xff]   ;;  %v3181_v5 = vld [vmem:[#allocation5 + $0x200] ss:$16 sps:$4 sm:$0xff]  }
  0x71   :  { %1702 = vmatprep.subr.bf16.mxu0 %v3119_v24  ;;  %1866 = vmatprep.subr.bf16.mxu1 %v3121_v25  ;;  %v3184_v6 = vld [vmem:[#allocation5 + $0x208] ss:$16 sps:$4 sm:$0xff]   ;;  %v3189_v7 = vld [vmem:[#allocation5 + $0x224] ss:$16 sps:$4 sm:$0xff]   ;;  %v3192_v8 = vld [vmem:[#allocation5 + $0x22c] ss:$16 sps:$4 sm:$0xff]  }
  0x72   :  { %v3187_v9 = vld [vmem:[#allocation5 + $0x220] ss:$16 sps:$4 sm:$0xff]   ;;  %v3190_v10 = vld [vmem:[#allocation5 + $0x228] ss:$16 sps:$4 sm:$0xff]   ;;  %v3195_v11 = vld [vmem:[#allocation5 + $0x244] ss:$16 sps:$4 sm:$0xff]  }
  0x73   :  { %v3198_v12 = vld [vmem:[#allocation5 + $0x24c] ss:$16 sps:$4 sm:$0xff]   ;;  %v3193_v13 = vld [vmem:[#allocation5 + $0x240] ss:$16 sps:$4 sm:$0xff]   ;;  %v3196_v14 = vld [vmem:[#allocation5 + $0x248] ss:$16 sps:$4 sm:$0xff]  }
  0x74   :  { %1703 = vmatpush1.bf16.msra.mxu0 %v3123_v26  ;;  %1867 = vmatpush1.bf16.msra.mxu1 %v3124_v27  ;;  %v3201_v15 = vld [vmem:[#allocation5 + $0x264] ss:$16 sps:$4 sm:$0xff]   ;;  %v3204_v16 = vld [vmem:[#allocation5 + $0x26c] ss:$16 sps:$4 sm:$0xff]   ;;  %v3199_v17 = vld [vmem:[#allocation5 + $0x260] ss:$16 sps:$4 sm:$0xff]  }
  0x75   :  { %1704 = vmatprep.subr.bf16.mxu0 %v3125_v28  ;;  %1868 = vmatprep.subr.bf16.mxu1 %v3127_v29  ;;  %v3202_v18 = vld [vmem:[#allocation5 + $0x268] ss:$16 sps:$4 sm:$0xff]   ;;  %v3207_v19 = vld [vmem:[#allocation5 + $0x284] ss:$16 sps:$4 sm:$0xff]   ;;  %v3210_v20 = vld [vmem:[#allocation5 + $0x28c] ss:$16 sps:$4 sm:$0xff]  }
  0x76   :  { %v3205_v21 = vld [vmem:[#allocation5 + $0x280] ss:$16 sps:$4 sm:$0xff]   ;;  %v3208_v22 = vld [vmem:[#allocation5 + $0x288] ss:$16 sps:$4 sm:$0xff]   ;;  %v3213_v23 = vld [vmem:[#allocation5 + $0x2a4] ss:$16 sps:$4 sm:$0xff]  }
  0x77   :  { %v3216_v24 = vld [vmem:[#allocation5 + $0x2ac] ss:$16 sps:$4 sm:$0xff]   ;;  %v3211_v25 = vld [vmem:[#allocation5 + $0x2a0] ss:$16 sps:$4 sm:$0xff]   ;;  %v3214_v26 = vld [vmem:[#allocation5 + $0x2a8] ss:$16 sps:$4 sm:$0xff]  }
  0x78   :  { %1705 = vmatpush1.bf16.msra.mxu0 %v3129_v30  ;;  %1869 = vmatpush1.bf16.msra.mxu1 %v3130_v31  ;;  %v3219_v27 = vld [vmem:[#allocation5 + $0x2c4] ss:$16 sps:$4 sm:$0xff]   ;;  %v3222_v28 = vld [vmem:[#allocation5 + $0x2cc] ss:$16 sps:$4 sm:$0xff]   ;;  %v3217_v31 = vld [vmem:[#allocation5 + $0x2c0] ss:$16 sps:$4 sm:$0xff]  }
  0x79   :  { %1706 = vmatprep.subr.bf16.mxu0 %v3131_v32  ;;  %1870 = vmatprep.subr.bf16.mxu1 %v3133_v33  ;;  %v3794_v29 = vld [vmem:[#allocation2 + $0x8] sm:$0xff]  ;;  %v3225_v33 = vld [vmem:[#allocation5 + $0x2e4] ss:$16 sps:$4 sm:$0xff]   ;;  %s3674_s11 = smov [#allocation11]  }
  0x7a   :  { %v2629_v30 = vcombine.high %v3794_v29, %v3794_v29  ;;  %v3220_v32 = vld [vmem:[#allocation5 + $0x2c8] ss:$16 sps:$4 sm:$0xff]   ;;  %v3246_v46 = vld [vmem:[#allocation5 + $0x34c] ss:$16 sps:$4 sm:$0xff]   ;;  %s2615_s12 = sshll.u32 %s3674_s11, 4  ;;  %s2616_s12 = int_to_ptr.vmem [resolvable:$true] %s2615_s12 }
  0x7b   :  { %v3244_v48 = vld [vmem:[#allocation5 + $0x348] ss:$16 sps:$4 sm:$0xff]   ;;  %p3638_p13 = scmp.lt.s32.totalorder %s2616_s12, %s2616_s12 }
  0x7c   :  { %1707 = vmatpush1.bf16.msra.mxu0 %v3135_v34  ;;  %1871 = vmatpush1.bf16.msra.mxu1 %v3136_v35  ;;  %v3228_v34 = vld [vmem:[#allocation5 + $0x2ec] ss:$16 sps:$4 sm:$0xff]   ;;  %v3223_v35 = vld [vmem:[#allocation5 + $0x2e0] ss:$16 sps:$4 sm:$0xff]  }
  0x7d   :  { %1708 = vmatprep.subr.bf16.mxu0 %v3137_v36  ;;  %1872 = vmatprep.subr.bf16.mxu1 %v3139_v37  ;;  %v3226_v36 = vld [vmem:[#allocation5 + $0x2e8] ss:$16 sps:$4 sm:$0xff]   ;;  %v3231_v37 = vld [vmem:[#allocation5 + $0x304] ss:$16 sps:$4 sm:$0xff]  }
  0x80   :  { %1709 = vmatpush1.bf16.msra.mxu0 %v3141_v38  ;;  %1873 = vmatpush1.bf16.msra.mxu1 %v3142_v39  ;;  %v3234_v38 = vld [vmem:[#allocation5 + $0x30c] ss:$16 sps:$4 sm:$0xff]   ;;  %v3229_v39 = vld [vmem:[#allocation5 + $0x300] ss:$16 sps:$4 sm:$0xff]  }
  0x81   :  { %1710 = vmatprep.subr.bf16.mxu0 %v3143_v40  ;;  %1874 = vmatprep.subr.bf16.mxu1 %v3145_v41  ;;  %v3232_v40 = vld [vmem:[#allocation5 + $0x308] ss:$16 sps:$4 sm:$0xff]   ;;  %v3237_v41 = vld [vmem:[#allocation5 + $0x324] ss:$16 sps:$4 sm:$0xff]  }
  0x84   :  { %1711 = vmatpush1.bf16.msra.mxu0 %v3147_v42  ;;  %1875 = vmatpush1.bf16.msra.mxu1 %v3148_v43  ;;  %v3240_v42 = vld [vmem:[#allocation5 + $0x32c] ss:$16 sps:$4 sm:$0xff]   ;;  %v3235_v43 = vld [vmem:[#allocation5 + $0x320] ss:$16 sps:$4 sm:$0xff]  }
  0x85   :  { %1712 = vmatprep.subr.bf16.mxu0 %v3149_v44  ;;  %1876 = vmatprep.subr.bf16.mxu1 %v3151_v45  ;;  %v3238_v44 = vld [vmem:[#allocation5 + $0x328] ss:$16 sps:$4 sm:$0xff]   ;;  %v3243_v45 = vld [vmem:[#allocation5 + $0x344] ss:$16 sps:$4 sm:$0xff]  }
  0x88   :  { %1713 = vmatpush1.bf16.msra.mxu0 %v3153_v47  ;;  %1877 = vmatpush1.bf16.msra.mxu1 %v3154_v49  ;;  %v3241_v47 = vld [vmem:[#allocation5 + $0x340] ss:$16 sps:$4 sm:$0xff]   ;;  %v3249_v49 = vld [vmem:[#allocation5 + $0x364] ss:$16 sps:$4 sm:$0xff]  }
  0x89   :  { %1714 = vmatprep.subr.bf16.mxu0 %v3155_v50  ;;  %1878 = vmatprep.subr.bf16.mxu1 %v3157_v51  ;;  %v3252_v50 = vld [vmem:[#allocation5 + $0x36c] ss:$16 sps:$4 sm:$0xff]   ;;  %v3247_v51 = vld [vmem:[#allocation5 + $0x360] ss:$16 sps:$4 sm:$0xff]  }
  0x8c   :  { %1715 = vmatpush1.bf16.msra.mxu0 %v3159_v52  ;;  %1879 = vmatpush1.bf16.msra.mxu1 %v3160_v53  ;;  %v3250_v52 = vld [vmem:[#allocation5 + $0x368] ss:$16 sps:$4 sm:$0xff]   ;;  %v3255_v53 = vld [vmem:[#allocation5 + $0x384] ss:$16 sps:$4 sm:$0xff]  }
  0x8d   :  { %1716 = vmatprep.subr.bf16.mxu0 %v3161_v54  ;;  %1880 = vmatprep.subr.bf16.mxu1 %v3163_v55  ;;  %v3258_v54 = vld [vmem:[#allocation5 + $0x38c] ss:$16 sps:$4 sm:$0xff]   ;;  %v3253_v55 = vld [vmem:[#allocation5 + $0x380] ss:$16 sps:$4 sm:$0xff]  }
  0x90   :  { %1717 = vmatpush1.bf16.msra.mxu0 %v3165_v56  ;;  %1881 = vmatpush1.bf16.msra.mxu1 %v3166_v57  ;;  %v3256_v56 = vld [vmem:[#allocation5 + $0x388] ss:$16 sps:$4 sm:$0xff]   ;;  %v3261_v57 = vld [vmem:[#allocation5 + $0x3a4] ss:$16 sps:$4 sm:$0xff]  }
  0x91   :  { %1718 = vmatprep.subr.bf16.mxu0 %v3167_v58  ;;  %1882 = vmatprep.subr.bf16.mxu1 %v3169_v59  ;;  %v3264_v58 = vld [vmem:[#allocation5 + $0x3ac] ss:$16 sps:$4 sm:$0xff]   ;;  %v3259_v59 = vld [vmem:[#allocation5 + $0x3a0] ss:$16 sps:$4 sm:$0xff]  }
  0x94   :  { %1719 = vmatpush1.bf16.msra.mxu0 %v3171_v60  ;;  %1883 = vmatpush1.bf16.msra.mxu1 %v3172_v61  ;;  %v3262_v60 = vld [vmem:[#allocation5 + $0x3a8] ss:$16 sps:$4 sm:$0xff]   ;;  %v3267_v61 = vld [vmem:[#allocation5 + $0x3c4] ss:$16 sps:$4 sm:$0xff]  }
  0x95   :  { %1720 = vmatprep.subr.bf16.mxu0 %v3173_v62  ;;  %1884 = vmatprep.subr.bf16.mxu1 %v3175_v63  ;;  %v3270_v62 = vld [vmem:[#allocation5 + $0x3cc] ss:$16 sps:$4 sm:$0xff]   ;;  %v3265_v63 = vld [vmem:[#allocation5 + $0x3c0] ss:$16 sps:$4 sm:$0xff]  }
  0x98   :  { %1721 = vmatpush1.bf16.msra.mxu0 %v3177_v0  ;;  %1885 = vmatpush1.bf16.msra.mxu1 %v3178_v1  ;;  %v3268_v0 = vld [vmem:[#allocation5 + $0x3c8] ss:$16 sps:$4 sm:$0xff]   ;;  %v3273_v1 = vld [vmem:[#allocation5 + $0x3e4] ss:$16 sps:$4 sm:$0xff]  }
  0x99   :  { %1731 = vmatprep.subr.bf16.mxu0 %v3183_v2  ;;  %1895 = vmatprep.subr.bf16.mxu1 %v3186_v3  ;;  %v3276_v2 = vld [vmem:[#allocation5 + $0x3ec] ss:$16 sps:$4 sm:$0xff]   ;;  %v3271_v3 = vld [vmem:[#allocation5 + $0x3e0] ss:$16 sps:$4 sm:$0xff]  }
  0x9b   :  { %1723 = vmatmul.mubr.bf16.vlgmr.msra.gmra.mrb[0].mxu0 %v2626_v4  ;;  %1887 = vmatmul.mubr.bf16.vlgmr.msra.gmra.mrb[0].mxu1 %v2626_v4  ;;  %v3274_v4 = vld [vmem:[#allocation5 + $0x3e8] ss:$16 sps:$4 sm:$0xff]  }
  0x9c   :  { %1732 = vmatpush1.bf16.msra.mxu0 %v3181_v5  ;;  %1896 = vmatpush1.bf16.msra.mxu1 %v3184_v6  ;;  %v3281_v5 = vld [vmem:[#allocation5 + $0x404] ss:$16 sps:$4 sm:$0xff]   ;;  %v3284_v6 = vld [vmem:[#allocation5 + $0x40c] ss:$16 sps:$4 sm:$0xff]  }
  0x9d   :  { %1733 = vmatprep.subr.bf16.mxu0 %v3189_v7  ;;  %1897 = vmatprep.subr.bf16.mxu1 %v3192_v8  ;;  %v2628_v7 = vcombine.low %v3794_v29, %v3794_v29  ;;  %v3279_v8 = vld [vmem:[#allocation5 + $0x400] ss:$16 sps:$4 sm:$0xff]   ;;  %v3314_v29 = vld [vmem:[#allocation5 + $0x4ac] ss:$16 sps:$4 sm:$0xff]  }
  0x9e   :  { %1763 = vmatprep.mubr.bf16.mxu0 %v2629_v30  ;;  %1927 = vmatprep.mubr.bf16.mxu1 %v2629_v30  ;;  %v3309_v30 = vld [vmem:[#allocation5 + $0x4a0] ss:$16 sps:$4 sm:$0xff]  }
  0xa0   :  { %1734 = vmatpush1.bf16.msra.mxu0 %v3187_v9  ;;  %1898 = vmatpush1.bf16.msra.mxu1 %v3190_v10  ;;  %v3282_v9 = vld [vmem:[#allocation5 + $0x408] ss:$16 sps:$4 sm:$0xff]   ;;  %v3287_v10 = vld [vmem:[#allocation5 + $0x424] ss:$16 sps:$4 sm:$0xff]  }
  0xa1   :  { %1735 = vmatprep.subr.bf16.mxu0 %v3195_v11  ;;  %1899 = vmatprep.subr.bf16.mxu1 %v3198_v12  ;;  %v3800_v11 = vld [vmem:[#allocation2 + $0x10] sm:$0xff]  ;;  %v3290_v12 = vld [vmem:[#allocation5 + $0x42c] ss:$16 sps:$4 sm:$0xff]  }
  0xa4   :  { %1736 = vmatpush1.bf16.msra.mxu0 %v3193_v13  ;;  %1900 = vmatpush1.bf16.msra.mxu1 %v3196_v14  ;;  %v2631_v13 = vcombine.high %v3800_v11, %v3800_v11  ;;  %v3285_v14 = vld [vmem:[#allocation5 + $0x420] ss:$16 sps:$4 sm:$0xff]  }
  0xa5   :  { %1737 = vmatprep.subr.bf16.mxu0 %v3201_v15  ;;  %1901 = vmatprep.subr.bf16.mxu1 %v3204_v16  ;;  %v3288_v15 = vld [vmem:[#allocation5 + $0x428] ss:$16 sps:$4 sm:$0xff]   ;;  %v3293_v16 = vld [vmem:[#allocation5 + $0x444] ss:$16 sps:$4 sm:$0xff]  }
  0xa8   :  { %1738 = vmatpush1.bf16.msra.mxu0 %v3199_v17  ;;  %1902 = vmatpush1.bf16.msra.mxu1 %v3202_v18  ;;  %v3296_v17 = vld [vmem:[#allocation5 + $0x44c] ss:$16 sps:$4 sm:$0xff]   ;;  %v3291_v18 = vld [vmem:[#allocation5 + $0x440] ss:$16 sps:$4 sm:$0xff]  }
  0xa9   :  { %1739 = vmatprep.subr.bf16.mxu0 %v3207_v19  ;;  %1903 = vmatprep.subr.bf16.mxu1 %v3210_v20  ;;  %v3294_v19 = vld [vmem:[#allocation5 + $0x448] ss:$16 sps:$4 sm:$0xff]   ;;  %v3299_v20 = vld [vmem:[#allocation5 + $0x464] ss:$16 sps:$4 sm:$0xff]  }
  0xac   :  { %1740 = vmatpush1.bf16.msra.mxu0 %v3205_v21  ;;  %1904 = vmatpush1.bf16.msra.mxu1 %v3208_v22  ;;  %v3302_v21 = vld [vmem:[#allocation5 + $0x46c] ss:$16 sps:$4 sm:$0xff]   ;;  %v3297_v22 = vld [vmem:[#allocation5 + $0x460] ss:$16 sps:$4 sm:$0xff]  }
  0xad   :  { %1741 = vmatprep.subr.bf16.mxu0 %v3213_v23  ;;  %1905 = vmatprep.subr.bf16.mxu1 %v3216_v24  ;;  %v3300_v23 = vld [vmem:[#allocation5 + $0x468] ss:$16 sps:$4 sm:$0xff]   ;;  %v3305_v24 = vld [vmem:[#allocation5 + $0x484] ss:$16 sps:$4 sm:$0xff]  }
  0xb0   :  { %1742 = vmatpush1.bf16.msra.mxu0 %v3211_v25  ;;  %1906 = vmatpush1.bf16.msra.mxu1 %v3214_v26  ;;  %v3308_v25 = vld [vmem:[#allocation5 + $0x48c] ss:$16 sps:$4 sm:$0xff]   ;;  %v3303_v26 = vld [vmem:[#allocation5 + $0x480] ss:$16 sps:$4 sm:$0xff]  }
  0xb1   :  { %1743 = vmatprep.subr.bf16.mxu0 %v3219_v27  ;;  %1907 = vmatprep.subr.bf16.mxu1 %v3222_v28  ;;  %v3306_v27 = vld [vmem:[#allocation5 + $0x488] ss:$16 sps:$4 sm:$0xff]   ;;  %v3311_v28 = vld [vmem:[#allocation5 + $0x4a4] ss:$16 sps:$4 sm:$0xff]  }
  0xb4   :  { %1744 = vmatpush1.bf16.msra.mxu0 %v3217_v31  ;;  %1908 = vmatpush1.bf16.msra.mxu1 %v3220_v32  ;;  %v3312_v31 = vld [vmem:[#allocation5 + $0x4a8] ss:$16 sps:$4 sm:$0xff]   ;;  %v3317_v32 = vld [vmem:[#allocation5 + $0x4c4] ss:$16 sps:$4 sm:$0xff]  }
  0xb5   :  { %1745 = vmatprep.subr.bf16.mxu0 %v3225_v33  ;;  %1909 = vmatprep.subr.bf16.mxu1 %v3228_v34  ;;  %v3320_v33 = vld [vmem:[#allocation5 + $0x4cc] ss:$16 sps:$4 sm:$0xff]   ;;  %v3315_v34 = vld [vmem:[#allocation5 + $0x4c0] ss:$16 sps:$4 sm:$0xff]  }
  0xb8   :  { %1746 = vmatpush1.bf16.msra.mxu0 %v3223_v35  ;;  %1910 = vmatpush1.bf16.msra.mxu1 %v3226_v36  ;;  %v3318_v35 = vld [vmem:[#allocation5 + $0x4c8] ss:$16 sps:$4 sm:$0xff]   ;;  %v3323_v36 = vld [vmem:[#allocation5 + $0x4e4] ss:$16 sps:$4 sm:$0xff]  }
  0xb9   :  { %1747 = vmatprep.subr.bf16.mxu0 %v3231_v37  ;;  %1911 = vmatprep.subr.bf16.mxu1 %v3234_v38  ;;  %v3326_v37 = vld [vmem:[#allocation5 + $0x4ec] ss:$16 sps:$4 sm:$0xff]   ;;  %v3321_v38 = vld [vmem:[#allocation5 + $0x4e0] ss:$16 sps:$4 sm:$0xff]  }
  0xbc   :  { %1748 = vmatpush1.bf16.msra.mxu0 %v3229_v39  ;;  %1912 = vmatpush1.bf16.msra.mxu1 %v3232_v40  ;;  %v3324_v39 = vld [vmem:[#allocation5 + $0x4e8] ss:$16 sps:$4 sm:$0xff]   ;;  %v3329_v40 = vld [vmem:[#allocation5 + $0x504] ss:$16 sps:$4 sm:$0xff]  }
  0xbd   :  { %1749 = vmatprep.subr.bf16.mxu0 %v3237_v41  ;;  %1913 = vmatprep.subr.bf16.mxu1 %v3240_v42  ;;  %v3332_v41 = vld [vmem:[#allocation5 + $0x50c] ss:$16 sps:$4 sm:$0xff]   ;;  %v3327_v42 = vld [vmem:[#allocation5 + $0x500] ss:$16 sps:$4 sm:$0xff]  }
  0xc0   :  { %1750 = vmatpush1.bf16.msra.mxu0 %v3235_v43  ;;  %1914 = vmatpush1.bf16.msra.mxu1 %v3238_v44  ;;  %v3330_v43 = vld [vmem:[#allocation5 + $0x508] ss:$16 sps:$4 sm:$0xff]   ;;  %v3335_v44 = vld [vmem:[#allocation5 + $0x524] ss:$16 sps:$4 sm:$0xff]  }
  0xc1   :  { %1751 = vmatprep.subr.bf16.mxu0 %v3243_v45  ;;  %1915 = vmatprep.subr.bf16.mxu1 %v3246_v46  ;;  %v3338_v45 = vld [vmem:[#allocation5 + $0x52c] ss:$16 sps:$4 sm:$0xff]   ;;  %v3333_v46 = vld [vmem:[#allocation5 + $0x520] ss:$16 sps:$4 sm:$0xff]  }
  0xc4   :  { %1752 = vmatpush1.bf16.msra.mxu0 %v3241_v47  ;;  %1916 = vmatpush1.bf16.msra.mxu1 %v3244_v48  ;;  %v3336_v47 = vld [vmem:[#allocation5 + $0x528] ss:$16 sps:$4 sm:$0xff]   ;;  %v3341_v48 = vld [vmem:[#allocation5 + $0x544] ss:$16 sps:$4 sm:$0xff]  }
  0xc5   :  { %1753 = vmatprep.subr.bf16.mxu0 %v3249_v49  ;;  %1917 = vmatprep.subr.bf16.mxu1 %v3252_v50  ;;  %v3344_v49 = vld [vmem:[#allocation5 + $0x54c] ss:$16 sps:$4 sm:$0xff]   ;;  %v3339_v50 = vld [vmem:[#allocation5 + $0x540] ss:$16 sps:$4 sm:$0xff]  }
  0xc8   :  { %1754 = vmatpush1.bf16.msra.mxu0 %v3247_v51  ;;  %1918 = vmatpush1.bf16.msra.mxu1 %v3250_v52  ;;  %v3342_v51 = vld [vmem:[#allocation5 + $0x548] ss:$16 sps:$4 sm:$0xff]   ;;  %v3347_v52 = vld [vmem:[#allocation5 + $0x564] ss:$16 sps:$4 sm:$0xff]  }
  0xc9   :  { %1755 = vmatprep.subr.bf16.mxu0 %v3255_v53  ;;  %1919 = vmatprep.subr.bf16.mxu1 %v3258_v54  ;;  %v3350_v53 = vld [vmem:[#allocation5 + $0x56c] ss:$16 sps:$4 sm:$0xff]   ;;  %v3345_v54 = vld [vmem:[#allocation5 + $0x560] ss:$16 sps:$4 sm:$0xff]  }
  0xcc   :  { %1756 = vmatpush1.bf16.msra.mxu0 %v3253_v55  ;;  %1920 = vmatpush1.bf16.msra.mxu1 %v3256_v56  ;;  %v3348_v55 = vld [vmem:[#allocation5 + $0x568] ss:$16 sps:$4 sm:$0xff]   ;;  %v3353_v56 = vld [vmem:[#allocation5 + $0x584] ss:$16 sps:$4 sm:$0xff]  }
  0xcd   :  { %1757 = vmatprep.subr.bf16.mxu0 %v3261_v57  ;;  %1921 = vmatprep.subr.bf16.mxu1 %v3264_v58  ;;  %v3356_v57 = vld [vmem:[#allocation5 + $0x58c] ss:$16 sps:$4 sm:$0xff]   ;;  %v3351_v58 = vld [vmem:[#allocation5 + $0x580] ss:$16 sps:$4 sm:$0xff]  }
  0xd0   :  { %1758 = vmatpush1.bf16.msra.mxu0 %v3259_v59  ;;  %1922 = vmatpush1.bf16.msra.mxu1 %v3262_v60  ;;  %v3354_v59 = vld [vmem:[#allocation5 + $0x588] ss:$16 sps:$4 sm:$0xff]   ;;  %v3359_v60 = vld [vmem:[#allocation5 + $0x5a4] ss:$16 sps:$4 sm:$0xff]  }
  0xd1   :  { %1759 = vmatprep.subr.bf16.mxu0 %v3267_v61  ;;  %1923 = vmatprep.subr.bf16.mxu1 %v3270_v62  ;;  %v3362_v61 = vld [vmem:[#allocation5 + $0x5ac] ss:$16 sps:$4 sm:$0xff]   ;;  %v3357_v62 = vld [vmem:[#allocation5 + $0x5a0] ss:$16 sps:$4 sm:$0xff]  }
  0xd4   :  { %1760 = vmatpush1.bf16.msra.mxu0 %v3265_v63  ;;  %1924 = vmatpush1.bf16.msra.mxu1 %v3268_v0  ;;  %v3360_v63 = vld [vmem:[#allocation5 + $0x5a8] ss:$16 sps:$4 sm:$0xff]   ;;  %v3365_v0 = vld [vmem:[#allocation5 + $0x5c4] ss:$16 sps:$4 sm:$0xff]  }
  0xd5   :  { %1761 = vmatprep.subr.bf16.mxu0 %v3273_v1  ;;  %1925 = vmatprep.subr.bf16.mxu1 %v3276_v2  ;;  %v3368_v1 = vld [vmem:[#allocation5 + $0x5cc] ss:$16 sps:$4 sm:$0xff]   ;;  %v3363_v2 = vld [vmem:[#allocation5 + $0x5c0] ss:$16 sps:$4 sm:$0xff]  }
  0xd8   :  { %1762 = vmatpush1.bf16.msra.mxu0 %v3271_v3  ;;  %1926 = vmatpush1.bf16.msra.mxu1 %v3274_v4  ;;  %v3366_v3 = vld [vmem:[#allocation5 + $0x5c8] ss:$16 sps:$4 sm:$0xff]   ;;  %v3371_v4 = vld [vmem:[#allocation5 + $0x5e4] ss:$16 sps:$4 sm:$0xff]  }
  0xd9   :  { %1772 = vmatprep.subr.bf16.mxu0 %v3281_v5  ;;  %1936 = vmatprep.subr.bf16.mxu1 %v3284_v6  ;;  %v3374_v5 = vld [vmem:[#allocation5 + $0x5ec] ss:$16 sps:$4 sm:$0xff]   ;;  %v3369_v6 = vld [vmem:[#allocation5 + $0x5e0] ss:$16 sps:$4 sm:$0xff]  }
  0xdb   :  { %1764 = vmatmul.mubr.bf16.vlgmr.msra.gmra.mrb[0].mxu0 %v2628_v7  ;;  %1928 = vmatmul.mubr.bf16.vlgmr.msra.gmra.mrb[0].mxu1 %v2628_v7  ;;  %v3372_v7 = vld [vmem:[#allocation5 + $0x5e8] ss:$16 sps:$4 sm:$0xff]  }
  0xdc   :  { %1773 = vmatpush1.bf16.msra.mxu0 %v3279_v8  ;;  %1937 = vmatpush1.bf16.msra.mxu1 %v3282_v9  ;;  %v3379_v8 = vld [vmem:[#allocation5 + $0x604] ss:$16 sps:$4 sm:$0xff]   ;;  %v3382_v9 = vld [vmem:[#allocation5 + $0x60c] ss:$16 sps:$4 sm:$0xff]  }
  0xdd   :  { %1774 = vmatprep.subr.bf16.mxu0 %v3287_v10  ;;  %1938 = vmatprep.subr.bf16.mxu1 %v3290_v12  ;;  %v3377_v10 = vld [vmem:[#allocation5 + $0x600] ss:$16 sps:$4 sm:$0xff]   ;;  %v3380_v12 = vld [vmem:[#allocation5 + $0x608] ss:$16 sps:$4 sm:$0xff]  }
  0xde   :  { %1804 = vmatprep.mubr.bf16.mxu0 %v2631_v13  ;;  %1968 = vmatprep.mubr.bf16.mxu1 %v2631_v13  ;;  %v2630_v13 = vcombine.low %v3800_v11, %v3800_v11  ;;  %v3389_v11 = vld [vmem:[#allocation5 + $0x640] ss:$16 sps:$4 sm:$0xff]  }
  0xe0   :  { %1775 = vmatpush1.bf16.msra.mxu0 %v3285_v14  ;;  %1939 = vmatpush1.bf16.msra.mxu1 %v3288_v15  ;;  %v3806_v14 = vld [vmem:[#allocation2 + $0x18] sm:$0xff]  ;;  %v3385_v15 = vld [vmem:[#allocation5 + $0x624] ss:$16 sps:$4 sm:$0xff]  }
  0xe1   :  { %1776 = vmatprep.subr.bf16.mxu0 %v3293_v16  ;;  %1940 = vmatprep.subr.bf16.mxu1 %v3296_v17  ;;  %v3388_v16 = vld [vmem:[#allocation5 + $0x62c] ss:$16 sps:$4 sm:$0xff]   ;;  %v3383_v17 = vld [vmem:[#allocation5 + $0x620] ss:$16 sps:$4 sm:$0xff]  }
  0xe4   :  { %1777 = vmatpush1.bf16.msra.mxu0 %v3291_v18  ;;  %1941 = vmatpush1.bf16.msra.mxu1 %v3294_v19  ;;  %v3386_v18 = vld [vmem:[#allocation5 + $0x628] ss:$16 sps:$4 sm:$0xff]   ;;  %v2633_v19 = vcombine.high %v3806_v14, %v3806_v14 }
  0xe5   :  { %1778 = vmatprep.subr.bf16.mxu0 %v3299_v20  ;;  %1942 = vmatprep.subr.bf16.mxu1 %v3302_v21  ;;  %v3391_v20 = vld [vmem:[#allocation5 + $0x644] ss:$16 sps:$4 sm:$0xff]   ;;  %v3394_v21 = vld [vmem:[#allocation5 + $0x64c] ss:$16 sps:$4 sm:$0xff]  }
  0xe8   :  { %1779 = vmatpush1.bf16.msra.mxu0 %v3297_v22  ;;  %1943 = vmatpush1.bf16.msra.mxu1 %v3300_v23  ;;  %v3392_v22 = vld [vmem:[#allocation5 + $0x648] ss:$16 sps:$4 sm:$0xff]   ;;  %v3397_v23 = vld [vmem:[#allocation5 + $0x664] ss:$16 sps:$4 sm:$0xff]  }
  0xe9   :  { %1780 = vmatprep.subr.bf16.mxu0 %v3305_v24  ;;  %1944 = vmatprep.subr.bf16.mxu1 %v3308_v25  ;;  %v3400_v24 = vld [vmem:[#allocation5 + $0x66c] ss:$16 sps:$4 sm:$0xff]   ;;  %v3395_v25 = vld [vmem:[#allocation5 + $0x660] ss:$16 sps:$4 sm:$0xff]  }
  0xec   :  { %1781 = vmatpush1.bf16.msra.mxu0 %v3303_v26  ;;  %1945 = vmatpush1.bf16.msra.mxu1 %v3306_v27  ;;  %v3398_v26 = vld [vmem:[#allocation5 + $0x668] ss:$16 sps:$4 sm:$0xff]   ;;  %v3403_v27 = vld [vmem:[#allocation5 + $0x684] ss:$16 sps:$4 sm:$0xff]  }
  0xed   :  { %1782 = vmatprep.subr.bf16.mxu0 %v3311_v28  ;;  %1946 = vmatprep.subr.bf16.mxu1 %v3314_v29  ;;  %v3406_v28 = vld [vmem:[#allocation5 + $0x68c] ss:$16 sps:$4 sm:$0xff]   ;;  %v3401_v29 = vld [vmem:[#allocation5 + $0x680] ss:$16 sps:$4 sm:$0xff]  }
  0xf0   :  { %1783 = vmatpush1.bf16.msra.mxu0 %v3309_v30  ;;  %1947 = vmatpush1.bf16.msra.mxu1 %v3312_v31  ;;  %v3404_v30 = vld [vmem:[#allocation5 + $0x688] ss:$16 sps:$4 sm:$0xff]   ;;  %v3409_v31 = vld [vmem:[#allocation5 + $0x6a4] ss:$16 sps:$4 sm:$0xff]  }
  0xf1   :  { %1784 = vmatprep.subr.bf16.mxu0 %v3317_v32  ;;  %1948 = vmatprep.subr.bf16.mxu1 %v3320_v33  ;;  %v3412_v32 = vld [vmem:[#allocation5 + $0x6ac] ss:$16 sps:$4 sm:$0xff]   ;;  %v3407_v33 = vld [vmem:[#allocation5 + $0x6a0] ss:$16 sps:$4 sm:$0xff]  }
  0xf4   :  { %1785 = vmatpush1.bf16.msra.mxu0 %v3315_v34  ;;  %1949 = vmatpush1.bf16.msra.mxu1 %v3318_v35  ;;  %v3410_v34 = vld [vmem:[#allocation5 + $0x6a8] ss:$16 sps:$4 sm:$0xff]   ;;  %v3415_v35 = vld [vmem:[#allocation5 + $0x6c4] ss:$16 sps:$4 sm:$0xff]  }
  0xf5   :  { %1786 = vmatprep.subr.bf16.mxu0 %v3323_v36  ;;  %1950 = vmatprep.subr.bf16.mxu1 %v3326_v37  ;;  %v3418_v36 = vld [vmem:[#allocation5 + $0x6cc] ss:$16 sps:$4 sm:$0xff]   ;;  %v3413_v37 = vld [vmem:[#allocation5 + $0x6c0] ss:$16 sps:$4 sm:$0xff]  }
  0xf8   :  { %1787 = vmatpush1.bf16.msra.mxu0 %v3321_v38  ;;  %1951 = vmatpush1.bf16.msra.mxu1 %v3324_v39  ;;  %v3416_v38 = vld [vmem:[#allocation5 + $0x6c8] ss:$16 sps:$4 sm:$0xff]   ;;  %v3421_v39 = vld [vmem:[#allocation5 + $0x6e4] ss:$16 sps:$4 sm:$0xff]  }
  0xf9   :  { %1788 = vmatprep.subr.bf16.mxu0 %v3329_v40  ;;  %1952 = vmatprep.subr.bf16.mxu1 %v3332_v41  ;;  %v3424_v40 = vld [vmem:[#allocation5 + $0x6ec] ss:$16 sps:$4 sm:$0xff]   ;;  %v3419_v41 = vld [vmem:[#allocation5 + $0x6e0] ss:$16 sps:$4 sm:$0xff]  }
  0xfc   :  { %1789 = vmatpush1.bf16.msra.mxu0 %v3327_v42  ;;  %1953 = vmatpush1.bf16.msra.mxu1 %v3330_v43  ;;  %v3422_v42 = vld [vmem:[#allocation5 + $0x6e8] ss:$16 sps:$4 sm:$0xff]   ;;  %v3427_v43 = vld [vmem:[#allocation5 + $0x704] ss:$16 sps:$4 sm:$0xff]  }
  0xfd   :  { %1790 = vmatprep.subr.bf16.mxu0 %v3335_v44  ;;  %1954 = vmatprep.subr.bf16.mxu1 %v3338_v45  ;;  %v3430_v44 = vld [vmem:[#allocation5 + $0x70c] ss:$16 sps:$4 sm:$0xff]   ;;  %v3425_v45 = vld [vmem:[#allocation5 + $0x700] ss:$16 sps:$4 sm:$0xff]  }
 0x100   :  { %1791 = vmatpush1.bf16.msra.mxu0 %v3333_v46  ;;  %1955 = vmatpush1.bf16.msra.mxu1 %v3336_v47  ;;  %v3428_v46 = vld [vmem:[#allocation5 + $0x708] ss:$16 sps:$4 sm:$0xff]   ;;  %v3433_v47 = vld [vmem:[#allocation5 + $0x724] ss:$16 sps:$4 sm:$0xff]  }
 0x101   :  { %1792 = vmatprep.subr.bf16.mxu0 %v3341_v48  ;;  %1956 = vmatprep.subr.bf16.mxu1 %v3344_v49  ;;  %v3436_v48 = vld [vmem:[#allocation5 + $0x72c] ss:$16 sps:$4 sm:$0xff]   ;;  %v3431_v49 = vld [vmem:[#allocation5 + $0x720] ss:$16 sps:$4 sm:$0xff]  }
 0x104   :  { %1793 = vmatpush1.bf16.msra.mxu0 %v3339_v50  ;;  %1957 = vmatpush1.bf16.msra.mxu1 %v3342_v51  ;;  %v3434_v50 = vld [vmem:[#allocation5 + $0x728] ss:$16 sps:$4 sm:$0xff]   ;;  %v3439_v51 = vld [vmem:[#allocation5 + $0x744] ss:$16 sps:$4 sm:$0xff]  }
 0x105   :  { %1794 = vmatprep.subr.bf16.mxu0 %v3347_v52  ;;  %1958 = vmatprep.subr.bf16.mxu1 %v3350_v53  ;;  %v3442_v52 = vld [vmem:[#allocation5 + $0x74c] ss:$16 sps:$4 sm:$0xff]   ;;  %v3437_v53 = vld [vmem:[#allocation5 + $0x740] ss:$16 sps:$4 sm:$0xff]  }
 0x108   :  { %1795 = vmatpush1.bf16.msra.mxu0 %v3345_v54  ;;  %1959 = vmatpush1.bf16.msra.mxu1 %v3348_v55  ;;  %v3440_v54 = vld [vmem:[#allocation5 + $0x748] ss:$16 sps:$4 sm:$0xff]   ;;  %v3445_v55 = vld [vmem:[#allocation5 + $0x764] ss:$16 sps:$4 sm:$0xff]  }
 0x109   :  { %1796 = vmatprep.subr.bf16.mxu0 %v3353_v56  ;;  %1960 = vmatprep.subr.bf16.mxu1 %v3356_v57  ;;  %v3448_v56 = vld [vmem:[#allocation5 + $0x76c] ss:$16 sps:$4 sm:$0xff]   ;;  %v3443_v57 = vld [vmem:[#allocation5 + $0x760] ss:$16 sps:$4 sm:$0xff]  }
 0x10c   :  { %1797 = vmatpush1.bf16.msra.mxu0 %v3351_v58  ;;  %1961 = vmatpush1.bf16.msra.mxu1 %v3354_v59  ;;  %v3446_v58 = vld [vmem:[#allocation5 + $0x768] ss:$16 sps:$4 sm:$0xff]   ;;  %v3451_v59 = vld [vmem:[#allocation5 + $0x784] ss:$16 sps:$4 sm:$0xff]  }
 0x10d   :  { %1798 = vmatprep.subr.bf16.mxu0 %v3359_v60  ;;  %1962 = vmatprep.subr.bf16.mxu1 %v3362_v61  ;;  %v3454_v60 = vld [vmem:[#allocation5 + $0x78c] ss:$16 sps:$4 sm:$0xff]   ;;  %v3449_v61 = vld [vmem:[#allocation5 + $0x780] ss:$16 sps:$4 sm:$0xff]  }
 0x110   :  { %1799 = vmatpush1.bf16.msra.mxu0 %v3357_v62  ;;  %1963 = vmatpush1.bf16.msra.mxu1 %v3360_v63  ;;  %v3452_v62 = vld [vmem:[#allocation5 + $0x788] ss:$16 sps:$4 sm:$0xff]   ;;  %v3457_v63 = vld [vmem:[#allocation5 + $0x7a4] ss:$16 sps:$4 sm:$0xff]  }
 0x111   :  { %1800 = vmatprep.subr.bf16.mxu0 %v3365_v0  ;;  %1964 = vmatprep.subr.bf16.mxu1 %v3368_v1  ;;  %v3460_v0 = vld [vmem:[#allocation5 + $0x7ac] ss:$16 sps:$4 sm:$0xff]   ;;  %v3455_v1 = vld [vmem:[#allocation5 + $0x7a0] ss:$16 sps:$4 sm:$0xff]  }
 0x114   :  { %1801 = vmatpush1.bf16.msra.mxu0 %v3363_v2  ;;  %1965 = vmatpush1.bf16.msra.mxu1 %v3366_v3  ;;  %v3458_v2 = vld [vmem:[#allocation5 + $0x7a8] ss:$16 sps:$4 sm:$0xff]   ;;  %v3463_v3 = vld [vmem:[#allocation5 + $0x7c4] ss:$16 sps:$4 sm:$0xff]  }
 0x115   :  { %1802 = vmatprep.subr.bf16.mxu0 %v3371_v4  ;;  %1966 = vmatprep.subr.bf16.mxu1 %v3374_v5  ;;  %v3466_v4 = vld [vmem:[#allocation5 + $0x7cc] ss:$16 sps:$4 sm:$0xff]   ;;  %v3461_v5 = vld [vmem:[#allocation5 + $0x7c0] ss:$16 sps:$4 sm:$0xff]  }
 0x118   :  { %1803 = vmatpush1.bf16.msra.mxu0 %v3369_v6  ;;  %1967 = vmatpush1.bf16.msra.mxu1 %v3372_v7  ;;  %v3464_v6 = vld [vmem:[#allocation5 + $0x7c8] ss:$16 sps:$4 sm:$0xff]   ;;  %v3469_v7 = vld [vmem:[#allocation5 + $0x7e4] ss:$16 sps:$4 sm:$0xff]  }
 0x119   :  { %1813 = vmatprep.subr.bf16.mxu0 %v3379_v8  ;;  %1977 = vmatprep.subr.bf16.mxu1 %v3382_v9  ;;  %v3472_v8 = vld [vmem:[#allocation5 + $0x7ec] ss:$16 sps:$4 sm:$0xff]   ;;  %v3467_v9 = vld [vmem:[#allocation5 + $0x7e0] ss:$16 sps:$4 sm:$0xff]  }
 0x11b   :  { %1805 = vmatmul.mubr.bf16.vlgmr.msra.gmra.mrb[0].mxu0 %v2630_v13  ;;  %1969 = vmatmul.mubr.bf16.vlgmr.msra.gmra.mrb[0].mxu1 %v2630_v13  ;;  %v3476_v13 = vld [vmem:[#allocation7 + $0xc0] sm:$0xff]  }
 0x11c   :  { %1814 = vmatpush1.bf16.msra.mxu0 %v3377_v10  ;;  %1978 = vmatpush1.bf16.msra.mxu1 %v3380_v12  ;;  %v3470_v10 = vld [vmem:[#allocation5 + $0x7e8] ss:$16 sps:$4 sm:$0xff]   ;;  %v3475_v12 = vld [vmem:[#allocation7 + $0x40] sm:$0xff]  }
 0x11d   :  { %1815 = vmatprep.subr.bf16.mxu0 %v3385_v15  ;;  %1979 = vmatprep.subr.bf16.mxu1 %v3388_v16  ;;  %v2632_v15 = vcombine.low %v3806_v14, %v3806_v14  ;;  %v3477_v16 = vld [vmem:[#allocation7] sm:$0xff]   ;;  %v3485_v14 = vld [vmem:[#allocation7 + $0x10] sm:$0xff]  }
 0x11e   :  { %1845 = vmatprep.mubr.bf16.mxu0 %v2633_v19  ;;  %2009 = vmatprep.mubr.bf16.mxu1 %v2633_v19  ;;  %v3480_v19 = vld [vmem:[#allocation7 + $0xc8] sm:$0xff]  }
 0x120   :  { %1816 = vmatpush1.bf16.msra.mxu0 %v3383_v17  ;;  %1980 = vmatpush1.bf16.msra.mxu1 %v3386_v18  ;;  %v3478_v17 = vld [vmem:[#allocation7 + $0x80] sm:$0xff]   ;;  %v3479_v18 = vld [vmem:[#allocation7 + $0x48] sm:$0xff]  }
 0x121   :  { %1817 = vmatprep.subr.bf16.mxu0 %v3391_v20  ;;  %1981 = vmatprep.subr.bf16.mxu1 %v3394_v21  ;;  %v3481_v20 = vld [vmem:[#allocation7 + $0x8] sm:$0xff]  }
 0x122   :  { %v3482_v21 = vld [vmem:[#allocation7 + $0x88] sm:$0xff]  }
 0x124   :  { %1818 = vmatpush1.bf16.msra.mxu0 %v3389_v11  ;;  %1982 = vmatpush1.bf16.msra.mxu1 %v3392_v22  ;;  %v3483_v11 = vld [vmem:[#allocation7 + $0x50] sm:$0xff]  }
 0x125   :  { %1819 = vmatprep.subr.bf16.mxu0 %v3397_v23  ;;  %1983 = vmatprep.subr.bf16.mxu1 %v3400_v24  ;;  %v3484_v22 = vld [vmem:[#allocation7 + $0xd0] sm:$0xff]   ;;  %v3487_v24 = vld [vmem:[#allocation7 + $0x58] sm:$0xff]  }
 0x126   :  { %v3486_v23 = vld [vmem:[#allocation7 + $0x90] sm:$0xff]  }
 0x128   :  { %1820 = vmatpush1.bf16.msra.mxu0 %v3395_v25  ;;  %1984 = vmatpush1.bf16.msra.mxu1 %v3398_v26  ;;  %v3488_v25 = vld [vmem:[#allocation7 + $0xd8] sm:$0xff]  }
 0x129   :  { %1821 = vmatprep.subr.bf16.mxu0 %v3403_v27  ;;  %1985 = vmatprep.subr.bf16.mxu1 %v3406_v28  ;;  %v3489_v26 = vld [vmem:[#allocation7 + $0x18] sm:$0xff]   ;;  %v3491_v28 = vld [vmem:[#allocation7 + $0x60] sm:$0xff]  }
 0x12a   :  { %v3490_v27 = vld [vmem:[#allocation7 + $0x98] sm:$0xff]  }
 0x12c   :  { %1822 = vmatpush1.bf16.msra.mxu0 %v3401_v29  ;;  %1986 = vmatpush1.bf16.msra.mxu1 %v3404_v30  ;;  %v3492_v29 = vld [vmem:[#allocation7 + $0xe0] sm:$0xff]  }
 0x12d   :  { %1823 = vmatprep.subr.bf16.mxu0 %v3409_v31  ;;  %1987 = vmatprep.subr.bf16.mxu1 %v3412_v32  ;;  %v3493_v30 = vld [vmem:[#allocation7 + $0x20] sm:$0xff]   ;;  %v3495_v32 = vld [vmem:[#allocation7 + $0x68] sm:$0xff]  }
 0x12e   :  { %v3494_v31 = vld [vmem:[#allocation7 + $0xa0] sm:$0xff]  }
 0x130   :  { %1824 = vmatpush1.bf16.msra.mxu0 %v3407_v33  ;;  %1988 = vmatpush1.bf16.msra.mxu1 %v3410_v34  ;;  %v3496_v33 = vld [vmem:[#allocation7 + $0xe8] sm:$0xff]  }
 0x131   :  { %1825 = vmatprep.subr.bf16.mxu0 %v3415_v35  ;;  %1989 = vmatprep.subr.bf16.mxu1 %v3418_v36  ;;  %v3497_v34 = vld [vmem:[#allocation7 + $0x28] sm:$0xff]   ;;  %v3499_v36 = vld [vmem:[#allocation7 + $0x70] sm:$0xff]  }
 0x132   :  { %v3498_v35 = vld [vmem:[#allocation7 + $0xa8] sm:$0xff]  }
 0x134   :  { %1826 = vmatpush1.bf16.msra.mxu0 %v3413_v37  ;;  %1990 = vmatpush1.bf16.msra.mxu1 %v3416_v38  ;;  %v3500_v37 = vld [vmem:[#allocation7 + $0xf0] sm:$0xff]  }
 0x135   :  { %1827 = vmatprep.subr.bf16.mxu0 %v3421_v39  ;;  %1991 = vmatprep.subr.bf16.mxu1 %v3424_v40  ;;  %v3501_v38 = vld [vmem:[#allocation7 + $0x30] sm:$0xff]   ;;  %v3503_v40 = vld [vmem:[#allocation7 + $0x78] sm:$0xff]  }
 0x136   :  { %v3502_v39 = vld [vmem:[#allocation7 + $0xb0] sm:$0xff]  }
 0x138   :  { %1828 = vmatpush1.bf16.msra.mxu0 %v3419_v41  ;;  %1992 = vmatpush1.bf16.msra.mxu1 %v3422_v42  ;;  %v3504_v41 = vld [vmem:[#allocation7 + $0xf8] sm:$0xff]  }
 0x139   :  { %1829 = vmatprep.subr.bf16.mxu0 %v3427_v43  ;;  %1993 = vmatprep.subr.bf16.mxu1 %v3430_v44  ;;  %v3505_v42 = vld [vmem:[#allocation7 + $0x38] sm:$0xff]   ;;  %v3672_v44 = vmov 0.0  }
 0x13a   :  { %v3506_v43 = vld [vmem:[#allocation7 + $0xb8] sm:$0xff]  }
 0x13c   :  { %1830 = vmatpush1.bf16.msra.mxu0 %v3425_v45  ;;  %1994 = vmatpush1.bf16.msra.mxu1 %v3428_v46  ;;  %v362_v45 = vlaneseq }
 0x13d   :  { %1831 = vmatprep.subr.bf16.mxu0 %v3433_v47  ;;  %1995 = vmatprep.subr.bf16.mxu1 %v3436_v48 }
 0x13e   :  { %v363_v46 = vshrl.u32 %v362_v45, 7 }
 0x140   :  { %1832 = vmatpush1.bf16.msra.mxu0 %v3431_v49  ;;  %1996 = vmatpush1.bf16.msra.mxu1 %v3434_v50  ;;  %v364_v47 = vsub.s32 0, %v363_v46  ;;  %v372_v48 = vsub.s32 2, %v363_v46  ;;  %v360_v49 = vld [vmem:[%s3856_s2] sm:$0xf]  ;;  %v368_v50 = vsub.s32 1, %v363_v46 }
 0x141   :  { %1833 = vmatprep.subr.bf16.mxu0 %v3439_v51  ;;  %1997 = vmatprep.subr.bf16.mxu1 %v3442_v52  ;;  %v376_v51 = vsub.s32 3, %v363_v46 }
 0x142   :  { %v365_v52 = vrot.slane %v360_v49, %v364_v47  ;;  %v3521_v47 = vld [vmem:[#allocation10 + $0x30] sm:$0xff]  }
 0x144   :  { %1834 = vmatpush1.bf16.msra.mxu0 %v3437_v53  ;;  %1998 = vmatpush1.bf16.msra.mxu1 %v3440_v54  ;;  %v373_v53 = vrot.slane %v360_v49, %v372_v48  ;;  %v369_v54 = vrot.slane %v360_v49, %v368_v50  ;;  %v3522_v48 = vld [vmem:[#allocation10 + $0x38] sm:$0xff]  }
 0x145   :  { %1835 = vmatprep.subr.bf16.mxu0 %v3445_v55  ;;  %1999 = vmatprep.subr.bf16.mxu1 %v3448_v56  ;;  %v377_v55 = vrot.slane %v360_v49, %v376_v51  ;;  %v2923_v49 = vld [vmem:[%s3860_s6] ss:$0 sm:$0xff]  ;;  %s3633_s6 = scalar_lea.vmem %s2616_s12, 64 }
 0x146   :  { %p3634_p12 = scmp.ne.s32.totalorder %s2616_s12, %s3633_s6  ;;  %p3639_p0 = scmp.lt.s32.totalorder %s3633_s6, %s3633_s6 }
 0x148   :  { %1836 = vmatpush1.bf16.msra.mxu0 %v3443_v57  ;;  %2000 = vmatpush1.bf16.msra.mxu1 %v3446_v58  ;;  %p3640_p1 = por %p3639_p0, %p3638_p13 }
 0x149   :  { %1837 = vmatprep.subr.bf16.mxu0 %v3451_v59  ;;  %2001 = vmatprep.subr.bf16.mxu1 %v3454_v60 }
 0x14a   :  { %p3641_p2 = pnand %p3640_p1, %p3634_p12 }
 0x14c   :  { %1838 = vmatpush1.bf16.msra.mxu0 %v3449_v61  ;;  %2002 = vmatpush1.bf16.msra.mxu1 %v3452_v62 }
 0x14d   :  { %1839 = vmatprep.subr.bf16.mxu0 %v3457_v63  ;;  %2003 = vmatprep.subr.bf16.mxu1 %v3460_v0 }
 0x150   :  { %1840 = vmatpush1.bf16.msra.mxu0 %v3455_v1  ;;  %2004 = vmatpush1.bf16.msra.mxu1 %v3458_v2 }
 0x151   :  { %1841 = vmatprep.subr.bf16.mxu0 %v3463_v3  ;;  %2005 = vmatprep.subr.bf16.mxu1 %v3466_v4 }
 0x154   :  { %1842 = vmatpush1.bf16.msra.mxu0 %v3461_v5  ;;  %2006 = vmatpush1.bf16.msra.mxu1 %v3464_v6 }
 0x155   :  { %1843 = vmatprep.subr.bf16.mxu0 %v3469_v7  ;;  %2007 = vmatprep.subr.bf16.mxu1 %v3472_v8 }
 0x158   :  { %1844 = vmatpush1.bf16.msra.mxu0 %v3467_v9  ;;  %2008 = vmatpush1.bf16.msra.mxu1 %v3470_v10 }
 0x159   :  { %2941 = vmatprep.subr.bf16.mxu0 %v3475_v12  ;;  %2963 = vmatprep.subr.bf16.mxu1 %v3476_v13 }
 0x15b   :  { %1846 = vmatmul.mubr.bf16.vlgmr.msra.gmra.mrb[0].mxu0 %v2632_v15  ;;  %2010 = vmatmul.mubr.bf16.vlgmr.msra.gmra.mrb[0].mxu1 %v2632_v15 }
 0x15c   :  { %2942 = vmatpush3.bf16.msra.mxu0 %v3477_v16  ;;  %2964 = vmatpush3.bf16.msra.mxu1 %v3478_v17  ;;  %v3507_v16 = vld [vmem:[#allocation8] sm:$0xff]  }
 0x15d   :  { %2943 = vmatprep.subr.bf16.mxu0 %v3479_v18  ;;  %2965 = vmatprep.subr.bf16.mxu1 %v3480_v19  ;;  %v3508_v19 = vld [vmem:[#allocation8 + $0x8] sm:$0xff]  }
 0x160   :  { %2944 = vmatpush3.bf16.msra.mxu0 %v3481_v20  ;;  %2966 = vmatpush3.bf16.msra.mxu1 %v3482_v21  ;;  %v3509_v20 = vld [vmem:[#allocation8 + $0x10] sm:$0xff]   ;;  %v3510_v21 = vld [vmem:[#allocation8 + $0x18] sm:$0xff]  }
 0x161   :  { %2945 = vmatprep.subr.bf16.mxu0 %v3483_v11  ;;  %2967 = vmatprep.subr.bf16.mxu1 %v3484_v22  ;;  %v3511_v11 = vld [vmem:[#allocation8 + $0x20] sm:$0xff]   ;;  %v3512_v22 = vld [vmem:[#allocation8 + $0x28] sm:$0xff]  }
 0x164   :  { %2946 = vmatpush3.bf16.msra.mxu0 %v3485_v14  ;;  %2968 = vmatpush3.bf16.msra.mxu1 %v3486_v23  ;;  %v3513_v14 = vld [vmem:[#allocation8 + $0x30] sm:$0xff]   ;;  %v3514_v23 = vld [vmem:[#allocation8 + $0x38] sm:$0xff]  }
 0x165   :  { %2947 = vmatprep.subr.bf16.mxu0 %v3487_v24  ;;  %2969 = vmatprep.subr.bf16.mxu1 %v3488_v25  ;;  %v3515_v24 = vld [vmem:[#allocation10] sm:$0xff]   ;;  %v3516_v25 = vld [vmem:[#allocation10 + $0x8] sm:$0xff]  }
 0x168   :  { %2948 = vmatpush3.bf16.msra.mxu0 %v3489_v26  ;;  %2970 = vmatpush3.bf16.msra.mxu1 %v3490_v27  ;;  %v3517_v26 = vld [vmem:[#allocation10 + $0x10] sm:$0xff]   ;;  %v3518_v27 = vld [vmem:[#allocation10 + $0x18] sm:$0xff]  }
 0x169   :  { %2949 = vmatprep.subr.bf16.mxu0 %v3491_v28  ;;  %2971 = vmatprep.subr.bf16.mxu1 %v3492_v29  ;;  %v3519_v28 = vld [vmem:[#allocation10 + $0x20] sm:$0xff]   ;;  %v3520_v29 = vld [vmem:[#allocation10 + $0x28] sm:$0xff]  }
 0x16c   :  { %2950 = vmatpush3.bf16.msra.mxu0 %v3493_v30  ;;  %2972 = vmatpush3.bf16.msra.mxu1 %v3494_v31 }
 0x16d   :  { %2951 = vmatprep.subr.bf16.mxu0 %v3495_v32  ;;  %2973 = vmatprep.subr.bf16.mxu1 %v3496_v33  ;;  %v2890_v32 = vld [vmem:[%s3858_s4] ss:$0 sm:$0xff] }
 0x170   :  { %2952 = vmatpush3.bf16.msra.mxu0 %v3497_v34  ;;  %2974 = vmatpush3.bf16.msra.mxu1 %v3498_v35 }
 0x171   :  { %2953 = vmatprep.subr.bf16.mxu0 %v3499_v36  ;;  %2975 = vmatprep.subr.bf16.mxu1 %v3500_v37 }
 0x174   :  { %2954 = vmatpush3.bf16.msra.mxu0 %v3501_v38  ;;  %2976 = vmatpush3.bf16.msra.mxu1 %v3502_v39 }
 0x175   :  { %2955 = vmatprep.subr.bf16.mxu0 %v3503_v40  ;;  %2977 = vmatprep.subr.bf16.mxu1 %v3504_v41 }
 0x178   :  { %2956 = vmatpush3.bf16.msra.mxu0 %v3505_v42  ;;  %2978 = vmatpush3.bf16.msra.mxu1 %v3506_v43 }
 0x179   :  { %3003 = vmatprep.subr.bf16.mxu0 %v3672_v44  ;;  %3023 = vmatprep.subr.bf16.mxu1 %v3672_v44 }
 0x22e   :  { %v1847_v56 = vpop.f32.mrb[0].mxu0  ;;  %v2011_v57 = vpop.f32.mrb[0].mxu1 }
 0x22f   :  { %v3043_v58 = vadd.f32 %v1847_v56, %v365_v52  ;;  %v3045_v59 = vadd.f32 %v2011_v57, %v373_v53  ;;  %v1849_v60 = vpop.f32.mrb[1].mxu0  ;;  %v2013_v61 = vpop.f32.mrb[1].mxu1 }
 0x230   :  { %v3044_v62 = vadd.f32 %v1849_v60, %v369_v54  ;;  %v3046_v63 = vadd.f32 %v2013_v61, %v377_v55  ;;  %v1851_v0 = vpop.f32.mrb[2].mxu0  ;;  %v2015_v1 = vpop.f32.mrb[2].mxu1 }
 0x231   :  { %vm2018_vm0 = vcmp.gt.f32.partialorder %v3043_v58, 0.0  ;;  %v2022_v2 = vmul.f32 0.2, %v3043_v58  ;;  %vm2020_vm1 = vcmp.gt.f32.partialorder %v3045_v59, 0.0  ;;  %v2024_v3 = vmul.f32 0.2, %v3045_v59 }
 0x232   :  { %vm2019_vm2 = vcmp.gt.f32.partialorder %v3044_v62, 0.0  ;;  %v2023_v4 = vmul.f32 0.2, %v3044_v62  ;;  %vm2021_vm3 = vcmp.gt.f32.partialorder %v3046_v63, 0.0  ;;  %v2025_v5 = vmul.f32 0.2, %v3046_v63 }
 0x233   :  { %v2026_v6 = vsel %vm2018_vm0, %v3043_v58, %v2022_v2  ;;  %v2028_v7 = vsel %vm2020_vm1, %v3045_v59, %v2024_v3  ;;  %v1852_v8 = vpop.f32.mrb[3].mxu0  ;;  %v2016_v9 = vpop.f32.mrb[3].mxu1 }
 0x234   :  { %v2027_v10 = vsel %vm2019_vm2, %v3044_v62, %v2023_v4  ;;  %v2029_v12 = vsel %vm2021_vm3, %v3046_v63, %v2025_v5  ;;  %v2030_v17 = vpack.c.bf16 %v2026_v6, %v2026_v6  ;;  %v2032_v18 = vpack.c.bf16 %v2028_v7, %v2028_v7 }
 0x235   :  { %v2031_v13 = vpack.c.bf16 %v2027_v10, %v2027_v10  ;;  %v2033_v15 = vpack.c.bf16 %v2029_v12, %v2029_v12 }
 0x237   :  { %2329 = vmatprep.mubr.bf16.mxu0 %v2031_v13  ;;  %2369 = vmatprep.mubr.bf16.mxu1 %v2033_v15 }
 0x238   :  { %2330 = vmatmul.mubr.bf16.vlgmr.msra.gmra.mrb[4].mxu0 %v2030_v17  ;;  %2370 = vmatmul.mubr.bf16.vlgmr.msra.gmra.mrb[4].mxu1 %v2032_v18 }
 0x239   :  { %3004 = vmatpush3.bf16.msra.mxu0 %v3507_v16  ;;  %3019 = vmatprep.mubr.msk.bf16.mxu0 %vm3673_vm4, %v3672_v44 }
 0x23a   :  { %3005 = vmatprep.subr.bf16.mxu0 %v3672_v44  ;;  %3039 = vmatprep.mubr.msk.bf16.mxu1 %vm3673_vm4, %v3672_v44 }
 0x23b   :  { %3024 = vmatpush3.bf16.msra.mxu1 %v3515_v24 }
 0x23c   :  { %3025 = vmatprep.subr.bf16.mxu1 %v3672_v44 }
 0x23d   :  { %3006 = vmatpush3.bf16.msra.mxu0 %v3508_v19 }
 0x23e   :  { %3007 = vmatprep.subr.bf16.mxu0 %v3672_v44 }
 0x23f   :  { %3026 = vmatpush3.bf16.msra.mxu1 %v3516_v25 }
 0x240   :  { %3027 = vmatprep.subr.bf16.mxu1 %v3672_v44 }
 0x241   :  { %3008 = vmatpush3.bf16.msra.mxu0 %v3509_v20 }
 0x242   :  { %3009 = vmatprep.subr.bf16.mxu0 %v3672_v44 }
 0x243   :  { %3028 = vmatpush3.bf16.msra.mxu1 %v3517_v26 }
 0x244   :  { %3029 = vmatprep.subr.bf16.mxu1 %v3672_v44 }
 0x245   :  { %3010 = vmatpush3.bf16.msra.mxu0 %v3510_v21 }
 0x246   :  { %3011 = vmatprep.subr.bf16.mxu0 %v3672_v44 }
 0x247   :  { %3030 = vmatpush3.bf16.msra.mxu1 %v3518_v27 }
 0x248   :  { %3031 = vmatprep.subr.bf16.mxu1 %v3672_v44 }
 0x249   :  { %3012 = vmatpush3.bf16.msra.mxu0 %v3511_v11 }
 0x24a   :  { %3013 = vmatprep.subr.bf16.mxu0 %v3672_v44 }
 0x24b   :  { %3032 = vmatpush3.bf16.msra.mxu1 %v3519_v28 }
 0x24c   :  { %3033 = vmatprep.subr.bf16.mxu1 %v3672_v44 }
 0x24d   :  { %3014 = vmatpush3.bf16.msra.mxu0 %v3512_v22 }
 0x24e   :  { %3015 = vmatprep.subr.bf16.mxu0 %v3672_v44 }
 0x24f   :  { %3034 = vmatpush3.bf16.msra.mxu1 %v3520_v29 }
 0x250   :  { %3035 = vmatprep.subr.bf16.mxu1 %v3672_v44 }
 0x251   :  { %3016 = vmatpush3.bf16.msra.mxu0 %v3513_v14 }
 0x252   :  { %3017 = vmatprep.subr.bf16.mxu0 %v3672_v44 }
 0x253   :  { %3036 = vmatpush3.bf16.msra.mxu1 %v3521_v47 }
 0x254   :  { %3037 = vmatprep.subr.bf16.mxu1 %v3672_v44  ;;  %v2932_v44 = vld [vmem:[%s3862_s8] ss:$0 sm:$0xff] }
 0x255   :  { %3018 = vmatpush3.bf16.msra.mxu0 %v3514_v23 }
 0x257   :  { %3038 = vmatpush3.bf16.msra.mxu1 %v3522_v48 }
 0x30b   :  { %v2957_v30 = vpop.f32.mrb[4].mxu0  ;;  %v2979_v31 = vpop.f32.mrb[4].mxu1 }
 0x30c   :  { %v2958_v33 = vpop.f32.mrb[5].mxu0  ;;  %v2980_v34 = vpop.f32.mrb[5].mxu1 }
 0x30d   :  { %v2959_v35 = vadd.f32 %v2958_v33, %v2957_v30  ;;  %v2981_v36 = vadd.f32 %v2980_v34, %v2979_v31  ;;  %v2960_v37 = vpop.f32.mrb[6].mxu0  ;;  %v2982_v38 = vpop.f32.mrb[6].mxu1 }
 0x30e   :  { %v2961_v39 = vpop.f32.mrb[7].mxu0  ;;  %v2983_v40 = vpop.f32.mrb[7].mxu1 }
 0x30f   :  { %v2332_v41 = vadd.f32 %v2959_v35, %v2890_v32 }
 0x311   :  { %v2372_v42 = vadd.f32 %v2981_v36, %v2332_v41 }
 0x313   :  { %vm2377_vm5 = vcmp.gt.f32.partialorder %v2372_v42, 0.0  ;;  %v2378_v43 = vmul.f32 0.1, %v2372_v42 }
 0x315   :  { %v2379_v45 = vsel %vm2377_vm5, %v2372_v42, %v2378_v43 }
 0x316   :  { %v2380_v46 = vpack.c.bf16 %v2379_v45, %v2379_v45 }
 0x318   :  { %3020 = vmatmul.mubr.bf16.vlgmr.msra.gmra.mrb[8].mxu0 %v2380_v46 }
 0x3eb   :  { %v2486_v50 = vpop.f32.mrb[8].mxu0 }
 0x3ec   :  { %v2487_v51 = vadd.f32 %v2923_v49, %v2486_v50  ;;  %v3021_v52 = vpop.f32.mrb[9].mxu0 }
 0x3ed   :  { %v2489_v53 = vpop.f32.mrb[10].mxu0 }
 0x3ee   :  { %vm2492_vm6 = vcmp.gt.f32.partialorder %v2487_v51, 0.0  ;;  %v2493_v54 = vmul.f32 0.1, %v2487_v51  ;;  %v3022_v55 = vpop.f32.mrb[11].mxu0 }
 0x3f0   :  { %v2494_v56 = vsel %vm2492_vm6, %v2487_v51, %v2493_v54 }
 0x3f1   :  { %v2495_v57 = vpack.c.bf16 %v2494_v56, %v2494_v56 }
 0x3f3   :  { %3040 = vmatmul.mubr.bf16.vlgmr.msra.gmra.mrb[8].mxu1 %v2495_v57 }
 0x4c6   :  { %v2601_v58 = vpop.f32.mrb[8].mxu1 }
 0x4c7   :  { %v2602_v59 = vadd.f32 %v2932_v44, %v2601_v58  ;;  %v3041_v60 = vpop.f32.mrb[9].mxu1 }
 0x4c8   :  { %v2604_v61 = vpop.f32.mrb[10].mxu1 }
 0x4c9   :  { %v2607_v62 = vpack.c.bf16 %v2602_v59, %v2602_v59  ;;  %v3042_v63 = vpop.f32.mrb[11].mxu1 }
 0x4cb   :  { %2608 = vst [vmem:[#allocation11] sm:$0xf] %v2607_v62 }
 0x4cc   :  { %3644 = shalt.err (!%p3641_p2)
}
 0x4cd   :  { %s3645_s8 = scalar_lea.hbm %s3863_s9, 64 }
 0x4ce   :  { %p3646_p3 = scmp.ne.s32.totalorder %s3863_s9, %s3645_s8  ;;  %p3649_p4 = scmp.lt.u32.totalorder %s3645_s8, %s3863_s9 }
 0x4d0   :  { %p3651_p5 = pnand %p3649_p4, %p3646_p3 }
 0x4d2   :  { %3654 = shalt.err (!%p3651_p5)
}
 0x4d3   :  { %2618 = dma.vmem_to_hbm [thread:$0]  %s2616_s12, 64, %s3863_s9, [#allocation4]  }
 0x4d4   :  { %3661 = dma.done.wait [#allocation4], 64  }
 0x4d5   :  { %3662 = vsyncadd [#allocation4], 4294967232 }
 0x4d6   :  { %2622 = vsyncpa [#allocation3], 1 }
 0x4d7   :  { %2623 = vsyncpa [#allocation6], 1 }
 0x4d8   :  { %2624 = vsyncpa [#allocation9], 1 }
 0x4d9   :  { %2625 = vsyncpa [#allocation4], 1 }

</bundles_post_ra>
